<compile_context>
chip_gen: v7x
topology: tpu7x:2x2x1
jax: 0.10.0
libtpu: 0.0.40
codegen_flags: <defaults>
</compile_context>

<pallas_src>
import math
import functools

import jax
import jax.numpy as jnp
from jax.experimental import pallas as pl
from jax.experimental.pallas import tpu as pltpu

NUM_HEADS = 4
LN_EPS = 1e-5
NEG_INF = -1e30


# --------------------------------- kernel -----------------------------------

def _block_kernel(q_ref, k0_ref, v0_ref, k1_ref, v1_ref, w_ref, vec_ref,
                  out_ref, *, nb, lqp, lk0p, lk1p, lk0, lk1, dh, num_heads,
                  w_offs):
    """Fused attn1 -> attn2 for a block of `nb` batch elements.

    q_ref  : (nb*lqp,  Dq)   flattened+padded query rows
    k0_ref : (nb*lk0p, D1)   attn1 key rows   (v0_ref same shape)
    k1_ref : (nb*lk1p, D2)   attn2 key rows   (v1_ref same shape)
    w_ref  : (R, H)          row-concatenated weight slab (see w_offs)
    vec_ref: (13, H)         bias / LayerNorm vector slab
    out_ref: (nb*lqp, H)
    """
    f32 = jnp.float32

    def mat(name):
        o, r = w_offs[name]
        return w_ref[o:o + r, :]

    def vec(i):
        return vec_ref[i:i + 1, :]

    def layer_norm(x, g, b):
        mu = jnp.mean(x, axis=-1, keepdims=True)
        var = jnp.mean((x - mu) ** 2, axis=-1, keepdims=True)
        return (x - mu) * jax.lax.rsqrt(var + LN_EPS) * g + b

    def attn_core(qp, kp, vp, lkp, lk_true):
        # qp: (nb*lqp, H) scaled Q projection; kp/vp: (nb*lkp, H)
        if lk_true < lkp:
            col = jax.lax.broadcasted_iota(jnp.int32, (lqp, lkp), 1)
            bias = jnp.where(col < lk_true, 0.0, NEG_INF).astype(f32)
        else:
            bias = None
        outs = []
        for b in range(nb):                       # static, nb <= 8
            q_b = qp[b * lqp:(b + 1) * lqp, :]
            k_b = kp[b * lkp:(b + 1) * lkp, :]
            v_b = vp[b * lkp:(b + 1) * lkp, :]
            heads = []
            for h in range(num_heads):            # static, 4
                qh = q_b[:, h * dh:(h + 1) * dh]
                kh = k_b[:, h * dh:(h + 1) * dh]
                vh = v_b[:, h * dh:(h + 1) * dh]
                # scores (lqp, lkp): contract head dim without a transpose
                s = jax.lax.dot_general(qh, kh, (((1,), (1,)), ((), ())),
                                        preferred_element_type=f32)
                if bias is not None:
                    s = s + bias                  # mask padded key columns
                s = s - jnp.max(s, axis=-1, keepdims=True)
                p = jnp.exp(s)
                p = p * pl.reciprocal(jnp.sum(p, axis=-1, keepdims=True),
                                      approx=True)
                heads.append(jnp.dot(p, vh, preferred_element_type=f32))
            outs.append(jnp.concatenate(heads, axis=-1))       # (lqp, H)
        return jnp.concatenate(outs, axis=0) if nb > 1 else outs[0]

    # ------------------------------ attn1 ------------------------------
    q_in = q_ref[...].astype(f32)                               # (nb*lqp, Dq)
    q1 = jnp.dot(q_in, mat("wq1"), preferred_element_type=f32) + vec(0)
    qp1 = jnp.dot(q1, mat("wiq1"), preferred_element_type=f32) + vec(1)
    kp1 = jnp.dot(k0_ref[...].astype(f32), mat("wkk1"),
                  preferred_element_type=f32) + vec(2)
    vp1 = jnp.dot(v0_ref[...].astype(f32), mat("wvv1"),
                  preferred_element_type=f32) + vec(3)
    a1 = attn_core(qp1, kp1, vp1, lk0p, lk0)
    a1 = jnp.dot(a1, mat("wo1"), preferred_element_type=f32) + vec(4)
    x1 = layer_norm(a1 + q1, vec(5), vec(6))                    # (nb*lqp, H)

    # ------------------- attn2 (q projection = Identity) ----------------
    qp2 = jnp.dot(x1, mat("wiq2"), preferred_element_type=f32) + vec(7)
    kp2 = jnp.dot(k1_ref[...].astype(f32), mat("wkk2"),
                  preferred_element_type=f32) + vec(8)
    vp2 = jnp.dot(v1_ref[...].astype(f32), mat("wvv2"),
                  preferred_element_type=f32) + vec(9)
    a2 = attn_core(qp2, kp2, vp2, lk1p, lk1)
    a2 = jnp.dot(a2, mat("wo2"), preferred_element_type=f32) + vec(10)
    y = layer_norm(a2 + x1, vec(11), vec(12))

    out_ref[...] = y.astype(out_ref.dtype)


# --------------------------------- wrapper -----------------------------------

def _pick_nb(B):
    """Batch elements per grid step: at least 2 steps when B > 1 (so multi-TC
    chips can shard the grid), at most 8 per step (bounded in-kernel unroll)."""
    if B <= 1:
        return max(B, 1)
    cands = [d for d in range(1, B) if B % d == 0 and d <= 8]
    return cands[-1]


def _flatten_pad(x, mult=8):
    """(B, L, D) -> (B*Lpad, D) with the sequence dim zero-padded to `mult`."""
    B, L, D = x.shape
    pad = (-L) % mult
    if pad:
        x = jnp.pad(x, ((0, 0), (0, pad), (0, 0)))
    return x.reshape(B * (L + pad), D), L + pad


def block_forward(query, key_0, value_0, key_1, value_1, packed):
    """Fused attn1 -> attn2 forward in a single pallas_call."""
    w_slab, vec_slab, w_offs = packed
    B, Lq, Dq = query.shape
    _, Lk0, D1 = key_0.shape
    _, Lk1, D2 = key_1.shape
    H = vec_slab.shape[-1]

    q2, lqp = _flatten_pad(query)
    k02, lk0p = _flatten_pad(key_0)
    v02, _ = _flatten_pad(value_0)
    k12, lk1p = _flatten_pad(key_1)
    v12, _ = _flatten_pad(value_1)

    nb = _pick_nb(B)
    steps = B // nb

    def dspec(lp, d):
        return pl.BlockSpec((nb * lp, d), lambda i: (i, 0))

    def wspec(w):
        return pl.BlockSpec(w.shape, lambda i: (0, 0))

    kernel = functools.partial(
        _block_kernel, nb=nb, lqp=lqp, lk0p=lk0p, lk1p=lk1p,
        lk0=Lk0, lk1=Lk1, dh=H // NUM_HEADS, num_heads=NUM_HEADS,
        w_offs=w_offs)

    out2d = pl.pallas_call(
        kernel,
        out_shape=jax.ShapeDtypeStruct((B * lqp, H), query.dtype),
        grid=(steps,),
        in_specs=[dspec(lqp, Dq), dspec(lk0p, D1), dspec(lk0p, D1),
                  dspec(lk1p, D2), dspec(lk1p, D2),
                  wspec(w_slab), wspec(vec_slab)],
        out_specs=pl.BlockSpec((nb * lqp, H), lambda i: (i, 0)),
        compiler_params=pltpu.CompilerParams(
            dimension_semantics=("parallel",)),
    )(q2, k02, v02, k12, v12, w_slab, vec_slab)

    out = out2d.reshape(B, lqp, H)
    if lqp != Lq:
        out = out[:, :Lq, :]
    return out


# ------------------------- parameter init / packing --------------------------

def _uniform(key, shape, fan_in):
    bound = 1.0 / math.sqrt(fan_in)
    return jax.random.uniform(key, shape, jnp.float32, -bound, bound)


def init_attention_params(key, embed_dim, dimk, dimv, hidden_dim):
    ks = jax.random.split(key, 10)
    p = {}
    if embed_dim != hidden_dim:
        p["wq"] = _uniform(ks[0], (embed_dim, hidden_dim), embed_dim)
        p["bq"] = _uniform(ks[1], (1, hidden_dim), embed_dim)
    else:                                   # nn.Identity
        p["wq"] = None
        p["bq"] = None
    # TODO(synk): the nn.Identity k/v branch (dimk == hidden or dimv == hidden)
    # is never hit by Block's configs; only the Linear k/v path is implemented.
    p["wk"] = _uniform(ks[2], (dimk, hidden_dim), dimk)
    p["bk"] = _uniform(ks[3], (1, hidden_dim), dimk)
    p["wv"] = _uniform(ks[4], (dimv, hidden_dim), dimv)
    p["bv"] = _uniform(ks[5], (1, hidden_dim), dimv)
    # MHA in_proj (stored pre-transposed: (in, out)) and out_proj
    p["wiq"] = _uniform(ks[6], (hidden_dim, hidden_dim), hidden_dim)
    p["biq"] = jnp.zeros((1, hidden_dim), jnp.float32)
    p["wik"] = _uniform(ks[7], (hidden_dim, hidden_dim), hidden_dim)
    p["bik"] = jnp.zeros((1, hidden_dim), jnp.float32)
    p["wiv"] = _uniform(ks[8], (hidden_dim, hidden_dim), hidden_dim)
    p["biv"] = jnp.zeros((1, hidden_dim), jnp.float32)
    p["wo"] = _uniform(ks[9], (hidden_dim, hidden_dim), hidden_dim)
    p["bo"] = jnp.zeros((1, hidden_dim), jnp.float32)
    # LayerNorm norm1 (norm2 is declared but unused in the PyTorch forward)
    p["gamma"] = jnp.ones((1, hidden_dim), jnp.float32)
    p["beta"] = jnp.zeros((1, hidden_dim), jnp.float32)
    return p


def init_block_params(key, hidden_dim, dimq, dim1, dim2):
    k1, k2 = jax.random.split(key)
    return {
        "attn1": init_attention_params(k1, dimq, dim1, dim1, hidden_dim),
        "attn2": init_attention_params(k2, hidden_dim, dim2, dim2, hidden_dim),
    }


def pack_block_params(raw, hidden_dim, num_heads=NUM_HEADS):
    """Host-side packing: compose k/v weight chains, fold the softmax scale
    into the Q in-projection, and pack everything into two lane-dense slabs."""
    p1, p2 = raw["attn1"], raw["attn2"]
    assert p1["wq"] is not None, "attn1 q-projection must be a Linear"
    assert p2["wq"] is None, "attn2 q-projection must be nn.Identity"
    dh = hidden_dim // num_heads
    scale = 1.0 / math.sqrt(dh)

    def compose_kv(p):
        wkk = p["wk"] @ p["wik"]
        bkk = p["bk"] @ p["wik"] + p["bik"]
        wvv = p["wv"] @ p["wiv"]
        bvv = p["bv"] @ p["wiv"] + p["biv"]
        return wkk, bkk, wvv, bvv

    wkk1, bkk1, wvv1, bvv1 = compose_kv(p1)
    wkk2, bkk2, wvv2, bvv2 = compose_kv(p2)

    mats = [("wq1", p1["wq"]), ("wiq1", p1["wiq"] * scale),
            ("wkk1", wkk1), ("wvv1", wvv1), ("wo1", p1["wo"]),
            ("wiq2", p2["wiq"] * scale), ("wkk2", wkk2), ("wvv2", wvv2),
            ("wo2", p2["wo"])]
    w_offs, parts, off = {}, [], 0
    for name, m in mats:
        r = m.shape[0]
        w_offs[name] = (off, r)
        pad = (-r) % 8                        # keep every segment 8-aligned
        parts.append(jnp.pad(m, ((0, pad), (0, 0))) if pad else m)
        off += r + pad
    w_slab = jnp.concatenate(parts, axis=0).astype(jnp.float32)

    vecs = [p1["bq"], p1["biq"] * scale, bkk1, bvv1, p1["bo"],
            p1["gamma"], p1["beta"],
            p2["biq"] * scale, bkk2, bvv2, p2["bo"], p2["gamma"], p2["beta"]]
    vec_slab = jnp.concatenate(
        [v.reshape(1, hidden_dim) for v in vecs], axis=0).astype(jnp.float32)
    return w_slab, vec_slab, w_offs


# ------------------------------ pure-JAX reference ---------------------------

def attention_ref(query, key, value, p, num_heads=NUM_HEADS):
    q = query if p["wq"] is None else query @ p["wq"] + p["bq"]
    k = key @ p["wk"] + p["bk"]
    v = value @ p["wv"] + p["bv"]
    qp = q @ p["wiq"] + p["biq"]
    kp = k @ p["wik"] + p["bik"]
    vp = v @ p["wiv"] + p["biv"]
    B, Lq, H = qp.shape
    Lk = kp.shape[1]
    dh = H // num_heads
    qh = qp.reshape(B, Lq, num_heads, dh).transpose(0, 2, 1, 3) / math.sqrt(dh)
    kh = kp.reshape(B, Lk, num_heads, dh).transpose(0, 2, 1, 3)
    vh = vp.reshape(B, Lk, num_heads, dh).transpose(0, 2, 1, 3)
    s = jnp.einsum("bhqd,bhkd->bhqk", qh, kh)
    a = jax.nn.softmax(s, axis=-1)
    o = jnp.einsum("bhqk,bhkd->bhqd", a, vh)
    o = o.transpose(0, 2, 1, 3).reshape(B, Lq, H)
    out = o @ p["wo"] + p["bo"]
    x = out + q
    mu = jnp.mean(x, axis=-1, keepdims=True)
    var = jnp.mean((x - mu) ** 2, axis=-1, keepdims=True)
    return (x - mu) / jnp.sqrt(var + LN_EPS) * p["gamma"] + p["beta"]


def block_ref(query, key_0, value_0, key_1, value_1, raw):
    x = attention_ref(query, key_0, value_0, raw["attn1"])
    return attention_ref(x, key_1, value_1, raw["attn2"])


# ------------------------------------ main -----------------------------------

if __name__ == "__main__":
    # Small shapes consistent with Block(hidden_dim, dimq, dim1, dim2)
    B, Lq, Lk0, Lk1 = 2, 8, 10, 6
    hidden_dim, dimq, dim1, dim2 = 32, 64, 48, 16   # hidden divisible by 4 heads

    root = jax.random.PRNGKey(0)
    kpar, kq, kk0, kv0, kk1, kv1 = jax.random.split(root, 6)

    raw_params = init_block_params(kpar, hidden_dim, dimq, dim1, dim2)
    packed_params = pack_block_params(raw_params, hidden_dim)

    query = jax.random.normal(kq, (B, Lq, dimq), jnp.float32)
    key_0 = jax.random.normal(kk0, (B, Lk0, dim1), jnp.float32)
    value_0 = jax.random.normal(kv0, (B, Lk0, dim1), jnp.float32)
    key_1 = jax.random.normal(kk1, (B, Lk1, dim2), jnp.float32)
    value_1 = jax.random.normal(kv1, (B, Lk1, dim2), jnp.float32)

    out = block_forward(query, key_0, value_0, key_1, value_1, packed_params)
    out = jax.block_until_ready(out)

    ref = block_ref(query, key_0, value_0, key_1, value_1, raw_params)
    assert out.shape == (B, Lq, hidden_dim)
    # tolerance accommodates the EUP approx reciprocal + host-side weight-chain
    # composition (both ~1e-4 relative)
    assert jnp.allclose(out, ref, atol=2e-3, rtol=2e-3), "mismatch vs reference"

    print("KERNEL_OK")
</pallas_src>

<mosaic_0001>
module attributes {stable_mosaic.version = 11 : i64} {
  func.func @_block_kernel(%arg0: i32, %arg1: memref<8x64xf32, #tpu.memory_space<vmem>>, %arg2: memref<16x48xf32, #tpu.memory_space<vmem>>, %arg3: memref<16x48xf32, #tpu.memory_space<vmem>>, %arg4: memref<8x16xf32, #tpu.memory_space<vmem>>, %arg5: memref<8x16xf32, #tpu.memory_space<vmem>>, %arg6: memref<320x32xf32, #tpu.memory_space<vmem>>, %arg7: memref<13x32xf32, #tpu.memory_space<vmem>>, %arg8: memref<8x32xf32, #tpu.memory_space<vmem>>) attributes {dimension_semantics = [#tpu.dimension_semantics<parallel>], iteration_bounds = array<i64: 2>, scalar_prefetch = 0 : i64, scratch_operands = 0 : i64, tpu.core_type = #tpu.core_type<tc>, window_params = [{transform_indices = @transform_0, window_bounds = array<i64: 8, 64>}, {transform_indices = @transform_1, window_bounds = array<i64: 16, 48>}, {transform_indices = @transform_2, window_bounds = array<i64: 16, 48>}, {transform_indices = @transform_3, window_bounds = array<i64: 8, 16>}, {transform_indices = @transform_4, window_bounds = array<i64: 8, 16>}, {pipeline_mode = #tpu.pipeline_mode<synchronous>, transform_indices = @transform_5, window_bounds = array<i64: 320, 32>}, {pipeline_mode = #tpu.pipeline_mode<synchronous>, transform_indices = @transform_6, window_bounds = array<i64: 13, 32>}, {transform_indices = @transform_7, window_bounds = array<i64: 8, 32>}]} {
    %c0 = arith.constant 0 : index
    %c0_0 = arith.constant 0 : index
    %0 = vector.load %arg1[%c0, %c0_0] : memref<8x64xf32, #tpu.memory_space<vmem>>, vector<8x64xf32>
    %c0_1 = arith.constant 0 : index
    %c0_2 = arith.constant 0 : index
    %1 = vector.load %arg6[%c0_1, %c0_2] : memref<320x32xf32, #tpu.memory_space<vmem>>, vector<64x32xf32>
    %cst = arith.constant dense<0.000000e+00> : vector<8x32xf32>
    %2 = tpu.matmul %0, %1, %cst {dimension_numbers = #tpu.dot_dimension_numbers<[1], [0], [0], [1], [0, 0, 1, 1], [], []>} : vector<8x64xf32>, vector<64x32xf32>, vector<8x32xf32> -> vector<8x32xf32>
    %c0_3 = arith.constant 0 : index
    %c0_4 = arith.constant 0 : index
    %3 = vector.load %arg7[%c0_3, %c0_4] : memref<13x32xf32, #tpu.memory_space<vmem>>, vector<1x32xf32>
    %4 = vector.broadcast %3 : vector<1x32xf32> to vector<8x32xf32>
    %5 = arith.addf %2, %4 : vector<8x32xf32>
    %c64 = arith.constant 64 : index
    %c0_5 = arith.constant 0 : index
    %6 = vector.load %arg6[%c64, %c0_5] : memref<320x32xf32, #tpu.memory_space<vmem>>, vector<32x32xf32>
    %cst_6 = arith.constant dense<0.000000e+00> : vector<8x32xf32>
    %7 = tpu.matmul %5, %6, %cst_6 {dimension_numbers = #tpu.dot_dimension_numbers<[1], [0], [0], [1], [0, 0, 1, 1], [], []>} : vector<8x32xf32>, vector<32x32xf32>, vector<8x32xf32> -> vector<8x32xf32>
    %c1 = arith.constant 1 : index
    %c0_7 = arith.constant 0 : index
    %8 = vector.load %arg7[%c1, %c0_7] : memref<13x32xf32, #tpu.memory_space<vmem>>, vector<1x32xf32>
    %9 = vector.broadcast %8 : vector<1x32xf32> to vector<8x32xf32>
    %10 = arith.addf %7, %9 : vector<8x32xf32>
    %c0_8 = arith.constant 0 : index
    %c0_9 = arith.constant 0 : index
    %11 = vector.load %arg2[%c0_8, %c0_9] : memref<16x48xf32, #tpu.memory_space<vmem>>, vector<16x48xf32>
    %c96 = arith.constant 96 : index
    %c0_10 = arith.constant 0 : index
    %12 = vector.load %arg6[%c96, %c0_10] : memref<320x32xf32, #tpu.memory_space<vmem>>, vector<48x32xf32>
    %cst_11 = arith.constant dense<0.000000e+00> : vector<16x32xf32>
    %13 = tpu.matmul %11, %12, %cst_11 {dimension_numbers = #tpu.dot_dimension_numbers<[1], [0], [0], [1], [0, 0, 1, 1], [], []>} : vector<16x48xf32>, vector<48x32xf32>, vector<16x32xf32> -> vector<16x32xf32>
    %c2 = arith.constant 2 : index
    %c0_12 = arith.constant 0 : index
    %14 = vector.load %arg7[%c2, %c0_12] : memref<13x32xf32, #tpu.memory_space<vmem>>, vector<1x32xf32>
    %15 = vector.broadcast %14 : vector<1x32xf32> to vector<16x32xf32>
    %16 = arith.addf %13, %15 : vector<16x32xf32>
    %c0_13 = arith.constant 0 : index
    %c0_14 = arith.constant 0 : index
    %17 = vector.load %arg3[%c0_13, %c0_14] : memref<16x48xf32, #tpu.memory_space<vmem>>, vector<16x48xf32>
    %c144 = arith.constant 144 : index
    %c0_15 = arith.constant 0 : index
    %18 = vector.load %arg6[%c144, %c0_15] : memref<320x32xf32, #tpu.memory_space<vmem>>, vector<48x32xf32>
    %cst_16 = arith.constant dense<0.000000e+00> : vector<16x32xf32>
    %19 = tpu.matmul %17, %18, %cst_16 {dimension_numbers = #tpu.dot_dimension_numbers<[1], [0], [0], [1], [0, 0, 1, 1], [], []>} : vector<16x48xf32>, vector<48x32xf32>, vector<16x32xf32> -> vector<16x32xf32>
    %c3 = arith.constant 3 : index
    %c0_17 = arith.constant 0 : index
    %20 = vector.load %arg7[%c3, %c0_17] : memref<13x32xf32, #tpu.memory_space<vmem>>, vector<1x32xf32>
    %21 = vector.broadcast %20 : vector<1x32xf32> to vector<16x32xf32>
    %22 = arith.addf %19, %21 : vector<16x32xf32>
    %23 = tpu.iota {dimensions = array<i32: 1>} : vector<8x16xi32>
    %c10_i32 = arith.constant 10 : i32
    %24 = vector.broadcast %c10_i32 : i32 to vector<8x16xi32>
    %25 = arith.cmpi slt, %23, %24 : vector<8x16xi32>
    %cst_18 = arith.constant 0.000000e+00 : f32
    %cst_19 = arith.constant -1.000000e+30 : f32
    %26 = vector.broadcast %cst_18 : f32 to vector<8x16xf32>
    %27 = vector.broadcast %cst_19 : f32 to vector<8x16xf32>
    %28 = arith.select %25, %26, %27 : vector<8x16xi1>, vector<8x16xf32>
    %29 = vector.extract_strided_slice %10 {offsets = [0, 0], sizes = [8, 8], strides = [1, 1]} : vector<8x32xf32> to vector<8x8xf32>
    %30 = vector.extract_strided_slice %16 {offsets = [0, 0], sizes = [16, 8], strides = [1, 1]} : vector<16x32xf32> to vector<16x8xf32>
    %31 = vector.extract_strided_slice %22 {offsets = [0, 0], sizes = [16, 8], strides = [1, 1]} : vector<16x32xf32> to vector<16x8xf32>
    %cst_20 = arith.constant dense<0.000000e+00> : vector<8x16xf32>
    %32 = tpu.matmul %29, %30, %cst_20 {dimension_numbers = #tpu.dot_dimension_numbers<[1], [1], [0], [0], [0, 0, 1, 0], [], []>} : vector<8x8xf32>, vector<16x8xf32>, vector<8x16xf32> -> vector<8x16xf32>
    %33 = arith.addf %32, %28 : vector<8x16xf32>
    %cst_21 = arith.constant dense<0xFF800000> : vector<8xf32>
    %34 = vector.multi_reduction <maximumf>, %33, %cst_21 [1] : vector<8x16xf32> to vector<8xf32>
    %35 = vector.shape_cast %34 : vector<8xf32> to vector<8x1xf32>
    %36 = vector.broadcast %35 : vector<8x1xf32> to vector<8x16xf32>
    %37 = arith.subf %33, %36 : vector<8x16xf32>
    %38 = math.exp %37 : vector<8x16xf32>
    %cst_22 = arith.constant dense<0.000000e+00> : vector<8xf32>
    %39 = vector.multi_reduction <add>, %38, %cst_22 [1] : vector<8x16xf32> to vector<8xf32>
    %40 = vector.shape_cast %39 : vector<8xf32> to vector<8x1xf32>
    %41 = tpu.reciprocal %40 {approx = true} : vector<8x1xf32> -> vector<8x1xf32>
    %42 = vector.broadcast %41 : vector<8x1xf32> to vector<8x16xf32>
    %43 = arith.mulf %38, %42 : vector<8x16xf32>
    %cst_23 = arith.constant dense<0.000000e+00> : vector<8x8xf32>
    %44 = tpu.matmul %43, %31, %cst_23 {dimension_numbers = #tpu.dot_dimension_numbers<[1], [0], [0], [1], [0, 0, 1, 1], [], []>} : vector<8x16xf32>, vector<16x8xf32>, vector<8x8xf32> -> vector<8x8xf32>
    %45 = vector.extract_strided_slice %10 {offsets = [0, 8], sizes = [8, 8], strides = [1, 1]} : vector<8x32xf32> to vector<8x8xf32>
    %46 = vector.extract_strided_slice %16 {offsets = [0, 8], sizes = [16, 8], strides = [1, 1]} : vector<16x32xf32> to vector<16x8xf32>
    %47 = vector.extract_strided_slice %22 {offsets = [0, 8], sizes = [16, 8], strides = [1, 1]} : vector<16x32xf32> to vector<16x8xf32>
    %cst_24 = arith.constant dense<0.000000e+00> : vector<8x16xf32>
    %48 = tpu.matmul %45, %46, %cst_24 {dimension_numbers = #tpu.dot_dimension_numbers<[1], [1], [0], [0], [0, 0, 1, 0], [], []>} : vector<8x8xf32>, vector<16x8xf32>, vector<8x16xf32> -> vector<8x16xf32>
    %49 = arith.addf %48, %28 : vector<8x16xf32>
    %cst_25 = arith.constant dense<0xFF800000> : vector<8xf32>
    %50 = vector.multi_reduction <maximumf>, %49, %cst_25 [1] : vector<8x16xf32> to vector<8xf32>
    %51 = vector.shape_cast %50 : vector<8xf32> to vector<8x1xf32>
    %52 = vector.broadcast %51 : vector<8x1xf32> to vector<8x16xf32>
    %53 = arith.subf %49, %52 : vector<8x16xf32>
    %54 = math.exp %53 : vector<8x16xf32>
    %cst_26 = arith.constant dense<0.000000e+00> : vector<8xf32>
    %55 = vector.multi_reduction <add>, %54, %cst_26 [1] : vector<8x16xf32> to vector<8xf32>
    %56 = vector.shape_cast %55 : vector<8xf32> to vector<8x1xf32>
    %57 = tpu.reciprocal %56 {approx = true} : vector<8x1xf32> -> vector<8x1xf32>
    %58 = vector.broadcast %57 : vector<8x1xf32> to vector<8x16xf32>
    %59 = arith.mulf %54, %58 : vector<8x16xf32>
    %cst_27 = arith.constant dense<0.000000e+00> : vector<8x8xf32>
    %60 = tpu.matmul %59, %47, %cst_27 {dimension_numbers = #tpu.dot_dimension_numbers<[1], [0], [0], [1], [0, 0, 1, 1], [], []>} : vector<8x16xf32>, vector<16x8xf32>, vector<8x8xf32> -> vector<8x8xf32>
    %61 = vector.extract_strided_slice %10 {offsets = [0, 16], sizes = [8, 8], strides = [1, 1]} : vector<8x32xf32> to vector<8x8xf32>
    %62 = vector.extract_strided_slice %16 {offsets = [0, 16], sizes = [16, 8], strides = [1, 1]} : vector<16x32xf32> to vector<16x8xf32>
    %63 = vector.extract_strided_slice %22 {offsets = [0, 16], sizes = [16, 8], strides = [1, 1]} : vector<16x32xf32> to vector<16x8xf32>
    %cst_28 = arith.constant dense<0.000000e+00> : vector<8x16xf32>
    %64 = tpu.matmul %61, %62, %cst_28 {dimension_numbers = #tpu.dot_dimension_numbers<[1], [1], [0], [0], [0, 0, 1, 0], [], []>} : vector<8x8xf32>, vector<16x8xf32>, vector<8x16xf32> -> vector<8x16xf32>
    %65 = arith.addf %64, %28 : vector<8x16xf32>
    %cst_29 = arith.constant dense<0xFF800000> : vector<8xf32>
    %66 = vector.multi_reduction <maximumf>, %65, %cst_29 [1] : vector<8x16xf32> to vector<8xf32>
    %67 = vector.shape_cast %66 : vector<8xf32> to vector<8x1xf32>
    %68 = vector.broadcast %67 : vector<8x1xf32> to vector<8x16xf32>
    %69 = arith.subf %65, %68 : vector<8x16xf32>
    %70 = math.exp %69 : vector<8x16xf32>
    %cst_30 = arith.constant dense<0.000000e+00> : vector<8xf32>
    %71 = vector.multi_reduction <add>, %70, %cst_30 [1] : vector<8x16xf32> to vector<8xf32>
    %72 = vector.shape_cast %71 : vector<8xf32> to vector<8x1xf32>
    %73 = tpu.reciprocal %72 {approx = true} : vector<8x1xf32> -> vector<8x1xf32>
    %74 = vector.broadcast %73 : vector<8x1xf32> to vector<8x16xf32>
    %75 = arith.mulf %70, %74 : vector<8x16xf32>
    %cst_31 = arith.constant dense<0.000000e+00> : vector<8x8xf32>
    %76 = tpu.matmul %75, %63, %cst_31 {dimension_numbers = #tpu.dot_dimension_numbers<[1], [0], [0], [1], [0, 0, 1, 1], [], []>} : vector<8x16xf32>, vector<16x8xf32>, vector<8x8xf32> -> vector<8x8xf32>
    %77 = vector.extract_strided_slice %10 {offsets = [0, 24], sizes = [8, 8], strides = [1, 1]} : vector<8x32xf32> to vector<8x8xf32>
    %78 = vector.extract_strided_slice %16 {offsets = [0, 24], sizes = [16, 8], strides = [1, 1]} : vector<16x32xf32> to vector<16x8xf32>
    %79 = vector.extract_strided_slice %22 {offsets = [0, 24], sizes = [16, 8], strides = [1, 1]} : vector<16x32xf32> to vector<16x8xf32>
    %cst_32 = arith.constant dense<0.000000e+00> : vector<8x16xf32>
    %80 = tpu.matmul %77, %78, %cst_32 {dimension_numbers = #tpu.dot_dimension_numbers<[1], [1], [0], [0], [0, 0, 1, 0], [], []>} : vector<8x8xf32>, vector<16x8xf32>, vector<8x16xf32> -> vector<8x16xf32>
    %81 = arith.addf %80, %28 : vector<8x16xf32>
    %cst_33 = arith.constant dense<0xFF800000> : vector<8xf32>
    %82 = vector.multi_reduction <maximumf>, %81, %cst_33 [1] : vector<8x16xf32> to vector<8xf32>
    %83 = vector.shape_cast %82 : vector<8xf32> to vector<8x1xf32>
    %84 = vector.broadcast %83 : vector<8x1xf32> to vector<8x16xf32>
    %85 = arith.subf %81, %84 : vector<8x16xf32>
    %86 = math.exp %85 : vector<8x16xf32>
    %cst_34 = arith.constant dense<0.000000e+00> : vector<8xf32>
    %87 = vector.multi_reduction <add>, %86, %cst_34 [1] : vector<8x16xf32> to vector<8xf32>
    %88 = vector.shape_cast %87 : vector<8xf32> to vector<8x1xf32>
    %89 = tpu.reciprocal %88 {approx = true} : vector<8x1xf32> -> vector<8x1xf32>
    %90 = vector.broadcast %89 : vector<8x1xf32> to vector<8x16xf32>
    %91 = arith.mulf %86, %90 : vector<8x16xf32>
    %cst_35 = arith.constant dense<0.000000e+00> : vector<8x8xf32>
    %92 = tpu.matmul %91, %79, %cst_35 {dimension_numbers = #tpu.dot_dimension_numbers<[1], [0], [0], [1], [0, 0, 1, 1], [], []>} : vector<8x16xf32>, vector<16x8xf32>, vector<8x8xf32> -> vector<8x8xf32>
    %93 = tpu.concatenate %44, %60, %76, %92 in 1 : vector<8x8xf32>, vector<8x8xf32>, vector<8x8xf32>, vector<8x8xf32> -> vector<8x32xf32>
    %c192 = arith.constant 192 : index
    %c0_36 = arith.constant 0 : index
    %94 = vector.load %arg6[%c192, %c0_36] : memref<320x32xf32, #tpu.memory_space<vmem>>, vector<32x32xf32>
    %cst_37 = arith.constant dense<0.000000e+00> : vector<8x32xf32>
    %95 = tpu.matmul %93, %94, %cst_37 {dimension_numbers = #tpu.dot_dimension_numbers<[1], [0], [0], [1], [0, 0, 1, 1], [], []>} : vector<8x32xf32>, vector<32x32xf32>, vector<8x32xf32> -> vector<8x32xf32>
    %c4 = arith.constant 4 : index
    %c0_38 = arith.constant 0 : index
    %96 = vector.load %arg7[%c4, %c0_38] : memref<13x32xf32, #tpu.memory_space<vmem>>, vector<1x32xf32>
    %97 = vector.broadcast %96 : vector<1x32xf32> to vector<8x32xf32>
    %98 = arith.addf %95, %97 : vector<8x32xf32>
    %99 = arith.addf %98, %5 : vector<8x32xf32>
    %c5 = arith.constant 5 : index
    %c0_39 = arith.constant 0 : index
    %100 = vector.load %arg7[%c5, %c0_39] : memref<13x32xf32, #tpu.memory_space<vmem>>, vector<1x32xf32>
    %c6 = arith.constant 6 : index
    %c0_40 = arith.constant 0 : index
    %101 = vector.load %arg7[%c6, %c0_40] : memref<13x32xf32, #tpu.memory_space<vmem>>, vector<1x32xf32>
    %cst_41 = arith.constant dense<0.000000e+00> : vector<8xf32>
    %102 = vector.multi_reduction <add>, %99, %cst_41 [1] : vector<8x32xf32> to vector<8xf32>
    %103 = vector.shape_cast %102 : vector<8xf32> to vector<8x1xf32>
    %cst_42 = arith.constant 3.200000e+01 : f32
    %104 = vector.broadcast %cst_42 : f32 to vector<8x1xf32>
    %105 = arith.divf %103, %104 : vector<8x1xf32>
    %106 = vector.broadcast %105 : vector<8x1xf32> to vector<8x32xf32>
    %107 = arith.subf %99, %106 : vector<8x32xf32>
    %108 = arith.mulf %107, %107 : vector<8x32xf32>
    %cst_43 = arith.constant dense<0.000000e+00> : vector<8xf32>
    %109 = vector.multi_reduction <add>, %108, %cst_43 [1] : vector<8x32xf32> to vector<8xf32>
    %110 = vector.shape_cast %109 : vector<8xf32> to vector<8x1xf32>
    %cst_44 = arith.constant 3.200000e+01 : f32
    %111 = vector.broadcast %cst_44 : f32 to vector<8x1xf32>
    %112 = arith.divf %110, %111 : vector<8x1xf32>
    %113 = vector.broadcast %105 : vector<8x1xf32> to vector<8x32xf32>
    %114 = arith.subf %99, %113 : vector<8x32xf32>
    %cst_45 = arith.constant 9.99999974E-6 : f32
    %115 = vector.broadcast %cst_45 : f32 to vector<8x1xf32>
    %116 = arith.addf %112, %115 : vector<8x1xf32>
    %117 = math.rsqrt %116 : vector<8x1xf32>
    %118 = vector.broadcast %117 : vector<8x1xf32> to vector<8x32xf32>
    %119 = arith.mulf %114, %118 : vector<8x32xf32>
    %120 = vector.broadcast %100 : vector<1x32xf32> to vector<8x32xf32>
    %121 = arith.mulf %119, %120 : vector<8x32xf32>
    %122 = vector.broadcast %101 : vector<1x32xf32> to vector<8x32xf32>
    %123 = arith.addf %121, %122 : vector<8x32xf32>
    %c224 = arith.constant 224 : index
    %c0_46 = arith.constant 0 : index
    %124 = vector.load %arg6[%c224, %c0_46] : memref<320x32xf32, #tpu.memory_space<vmem>>, vector<32x32xf32>
    %cst_47 = arith.constant dense<0.000000e+00> : vector<8x32xf32>
    %125 = tpu.matmul %123, %124, %cst_47 {dimension_numbers = #tpu.dot_dimension_numbers<[1], [0], [0], [1], [0, 0, 1, 1], [], []>} : vector<8x32xf32>, vector<32x32xf32>, vector<8x32xf32> -> vector<8x32xf32>
    %c7 = arith.constant 7 : index
    %c0_48 = arith.constant 0 : index
    %126 = vector.load %arg7[%c7, %c0_48] : memref<13x32xf32, #tpu.memory_space<vmem>>, vector<1x32xf32>
    %127 = vector.broadcast %126 : vector<1x32xf32> to vector<8x32xf32>
    %128 = arith.addf %125, %127 : vector<8x32xf32>
    %c0_49 = arith.constant 0 : index
    %c0_50 = arith.constant 0 : index
    %129 = vector.load %arg4[%c0_49, %c0_50] : memref<8x16xf32, #tpu.memory_space<vmem>>, vector<8x16xf32>
    %c256 = arith.constant 256 : index
    %c0_51 = arith.constant 0 : index
    %130 = vector.load %arg6[%c256, %c0_51] : memref<320x32xf32, #tpu.memory_space<vmem>>, vector<16x32xf32>
    %cst_52 = arith.constant dense<0.000000e+00> : vector<8x32xf32>
    %131 = tpu.matmul %129, %130, %cst_52 {dimension_numbers = #tpu.dot_dimension_numbers<[1], [0], [0], [1], [0, 0, 1, 1], [], []>} : vector<8x16xf32>, vector<16x32xf32>, vector<8x32xf32> -> vector<8x32xf32>
    %c8 = arith.constant 8 : index
    %c0_53 = arith.constant 0 : index
    %132 = vector.load %arg7[%c8, %c0_53] : memref<13x32xf32, #tpu.memory_space<vmem>>, vector<1x32xf32>
    %133 = vector.broadcast %132 : vector<1x32xf32> to vector<8x32xf32>
    %134 = arith.addf %131, %133 : vector<8x32xf32>
    %c0_54 = arith.constant 0 : index
    %c0_55 = arith.constant 0 : index
    %135 = vector.load %arg5[%c0_54, %c0_55] : memref<8x16xf32, #tpu.memory_space<vmem>>, vector<8x16xf32>
    %c272 = arith.constant 272 : index
    %c0_56 = arith.constant 0 : index
    %136 = vector.load %arg6[%c272, %c0_56] : memref<320x32xf32, #tpu.memory_space<vmem>>, vector<16x32xf32>
    %cst_57 = arith.constant dense<0.000000e+00> : vector<8x32xf32>
    %137 = tpu.matmul %135, %136, %cst_57 {dimension_numbers = #tpu.dot_dimension_numbers<[1], [0], [0], [1], [0, 0, 1, 1], [], []>} : vector<8x16xf32>, vector<16x32xf32>, vector<8x32xf32> -> vector<8x32xf32>
    %c9 = arith.constant 9 : index
    %c0_58 = arith.constant 0 : index
    %138 = vector.load %arg7[%c9, %c0_58] : memref<13x32xf32, #tpu.memory_space<vmem>>, vector<1x32xf32>
    %139 = vector.broadcast %138 : vector<1x32xf32> to vector<8x32xf32>
    %140 = arith.addf %137, %139 : vector<8x32xf32>
    %141 = tpu.iota {dimensions = array<i32: 1>} : vector<8x8xi32>
    %c6_i32 = arith.constant 6 : i32
    %142 = vector.broadcast %c6_i32 : i32 to vector<8x8xi32>
    %143 = arith.cmpi slt, %141, %142 : vector<8x8xi32>
    %cst_59 = arith.constant 0.000000e+00 : f32
    %cst_60 = arith.constant -1.000000e+30 : f32
    %144 = vector.broadcast %cst_59 : f32 to vector<8x8xf32>
    %145 = vector.broadcast %cst_60 : f32 to vector<8x8xf32>
    %146 = arith.select %143, %144, %145 : vector<8x8xi1>, vector<8x8xf32>
    %147 = vector.extract_strided_slice %128 {offsets = [0, 0], sizes = [8, 8], strides = [1, 1]} : vector<8x32xf32> to vector<8x8xf32>
    %148 = vector.extract_strided_slice %134 {offsets = [0, 0], sizes = [8, 8], strides = [1, 1]} : vector<8x32xf32> to vector<8x8xf32>
    %149 = vector.extract_strided_slice %140 {offsets = [0, 0], sizes = [8, 8], strides = [1, 1]} : vector<8x32xf32> to vector<8x8xf32>
    %cst_61 = arith.constant dense<0.000000e+00> : vector<8x8xf32>
    %150 = tpu.matmul %147, %148, %cst_61 {dimension_numbers = #tpu.dot_dimension_numbers<[1], [1], [0], [0], [0, 0, 1, 0], [], []>} : vector<8x8xf32>, vector<8x8xf32>, vector<8x8xf32> -> vector<8x8xf32>
    %151 = arith.addf %150, %146 : vector<8x8xf32>
    %cst_62 = arith.constant dense<0xFF800000> : vector<8xf32>
    %152 = vector.multi_reduction <maximumf>, %151, %cst_62 [1] : vector<8x8xf32> to vector<8xf32>
    %153 = vector.shape_cast %152 : vector<8xf32> to vector<8x1xf32>
    %154 = vector.broadcast %153 : vector<8x1xf32> to vector<8x8xf32>
    %155 = arith.subf %151, %154 : vector<8x8xf32>
    %156 = math.exp %155 : vector<8x8xf32>
    %cst_63 = arith.constant dense<0.000000e+00> : vector<8xf32>
    %157 = vector.multi_reduction <add>, %156, %cst_63 [1] : vector<8x8xf32> to vector<8xf32>
    %158 = vector.shape_cast %157 : vector<8xf32> to vector<8x1xf32>
    %159 = tpu.reciprocal %158 {approx = true} : vector<8x1xf32> -> vector<8x1xf32>
    %160 = vector.broadcast %159 : vector<8x1xf32> to vector<8x8xf32>
    %161 = arith.mulf %156, %160 : vector<8x8xf32>
    %cst_64 = arith.constant dense<0.000000e+00> : vector<8x8xf32>
    %162 = tpu.matmul %161, %149, %cst_64 {dimension_numbers = #tpu.dot_dimension_numbers<[1], [0], [0], [1], [0, 0, 1, 1], [], []>} : vector<8x8xf32>, vector<8x8xf32>, vector<8x8xf32> -> vector<8x8xf32>
    %163 = vector.extract_strided_slice %128 {offsets = [0, 8], sizes = [8, 8], strides = [1, 1]} : vector<8x32xf32> to vector<8x8xf32>
    %164 = vector.extract_strided_slice %134 {offsets = [0, 8], sizes = [8, 8], strides = [1, 1]} : vector<8x32xf32> to vector<8x8xf32>
    %165 = vector.extract_strided_slice %140 {offsets = [0, 8], sizes = [8, 8], strides = [1, 1]} : vector<8x32xf32> to vector<8x8xf32>
    %cst_65 = arith.constant dense<0.000000e+00> : vector<8x8xf32>
    %166 = tpu.matmul %163, %164, %cst_65 {dimension_numbers = #tpu.dot_dimension_numbers<[1], [1], [0], [0], [0, 0, 1, 0], [], []>} : vector<8x8xf32>, vector<8x8xf32>, vector<8x8xf32> -> vector<8x8xf32>
    %167 = arith.addf %166, %146 : vector<8x8xf32>
    %cst_66 = arith.constant dense<0xFF800000> : vector<8xf32>
    %168 = vector.multi_reduction <maximumf>, %167, %cst_66 [1] : vector<8x8xf32> to vector<8xf32>
    %169 = vector.shape_cast %168 : vector<8xf32> to vector<8x1xf32>
    %170 = vector.broadcast %169 : vector<8x1xf32> to vector<8x8xf32>
    %171 = arith.subf %167, %170 : vector<8x8xf32>
    %172 = math.exp %171 : vector<8x8xf32>
    %cst_67 = arith.constant dense<0.000000e+00> : vector<8xf32>
    %173 = vector.multi_reduction <add>, %172, %cst_67 [1] : vector<8x8xf32> to vector<8xf32>
    %174 = vector.shape_cast %173 : vector<8xf32> to vector<8x1xf32>
    %175 = tpu.reciprocal %174 {approx = true} : vector<8x1xf32> -> vector<8x1xf32>
    %176 = vector.broadcast %175 : vector<8x1xf32> to vector<8x8xf32>
    %177 = arith.mulf %172, %176 : vector<8x8xf32>
    %cst_68 = arith.constant dense<0.000000e+00> : vector<8x8xf32>
    %178 = tpu.matmul %177, %165, %cst_68 {dimension_numbers = #tpu.dot_dimension_numbers<[1], [0], [0], [1], [0, 0, 1, 1], [], []>} : vector<8x8xf32>, vector<8x8xf32>, vector<8x8xf32> -> vector<8x8xf32>
    %179 = vector.extract_strided_slice %128 {offsets = [0, 16], sizes = [8, 8], strides = [1, 1]} : vector<8x32xf32> to vector<8x8xf32>
    %180 = vector.extract_strided_slice %134 {offsets = [0, 16], sizes = [8, 8], strides = [1, 1]} : vector<8x32xf32> to vector<8x8xf32>
    %181 = vector.extract_strided_slice %140 {offsets = [0, 16], sizes = [8, 8], strides = [1, 1]} : vector<8x32xf32> to vector<8x8xf32>
    %cst_69 = arith.constant dense<0.000000e+00> : vector<8x8xf32>
    %182 = tpu.matmul %179, %180, %cst_69 {dimension_numbers = #tpu.dot_dimension_numbers<[1], [1], [0], [0], [0, 0, 1, 0], [], []>} : vector<8x8xf32>, vector<8x8xf32>, vector<8x8xf32> -> vector<8x8xf32>
    %183 = arith.addf %182, %146 : vector<8x8xf32>
    %cst_70 = arith.constant dense<0xFF800000> : vector<8xf32>
    %184 = vector.multi_reduction <maximumf>, %183, %cst_70 [1] : vector<8x8xf32> to vector<8xf32>
    %185 = vector.shape_cast %184 : vector<8xf32> to vector<8x1xf32>
    %186 = vector.broadcast %185 : vector<8x1xf32> to vector<8x8xf32>
    %187 = arith.subf %183, %186 : vector<8x8xf32>
    %188 = math.exp %187 : vector<8x8xf32>
    %cst_71 = arith.constant dense<0.000000e+00> : vector<8xf32>
    %189 = vector.multi_reduction <add>, %188, %cst_71 [1] : vector<8x8xf32> to vector<8xf32>
    %190 = vector.shape_cast %189 : vector<8xf32> to vector<8x1xf32>
    %191 = tpu.reciprocal %190 {approx = true} : vector<8x1xf32> -> vector<8x1xf32>
    %192 = vector.broadcast %191 : vector<8x1xf32> to vector<8x8xf32>
    %193 = arith.mulf %188, %192 : vector<8x8xf32>
    %cst_72 = arith.constant dense<0.000000e+00> : vector<8x8xf32>
    %194 = tpu.matmul %193, %181, %cst_72 {dimension_numbers = #tpu.dot_dimension_numbers<[1], [0], [0], [1], [0, 0, 1, 1], [], []>} : vector<8x8xf32>, vector<8x8xf32>, vector<8x8xf32> -> vector<8x8xf32>
    %195 = vector.extract_strided_slice %128 {offsets = [0, 24], sizes = [8, 8], strides = [1, 1]} : vector<8x32xf32> to vector<8x8xf32>
    %196 = vector.extract_strided_slice %134 {offsets = [0, 24], sizes = [8, 8], strides = [1, 1]} : vector<8x32xf32> to vector<8x8xf32>
    %197 = vector.extract_strided_slice %140 {offsets = [0, 24], sizes = [8, 8], strides = [1, 1]} : vector<8x32xf32> to vector<8x8xf32>
    %cst_73 = arith.constant dense<0.000000e+00> : vector<8x8xf32>
    %198 = tpu.matmul %195, %196, %cst_73 {dimension_numbers = #tpu.dot_dimension_numbers<[1], [1], [0], [0], [0, 0, 1, 0], [], []>} : vector<8x8xf32>, vector<8x8xf32>, vector<8x8xf32> -> vector<8x8xf32>
    %199 = arith.addf %198, %146 : vector<8x8xf32>
    %cst_74 = arith.constant dense<0xFF800000> : vector<8xf32>
    %200 = vector.multi_reduction <maximumf>, %199, %cst_74 [1] : vector<8x8xf32> to vector<8xf32>
    %201 = vector.shape_cast %200 : vector<8xf32> to vector<8x1xf32>
    %202 = vector.broadcast %201 : vector<8x1xf32> to vector<8x8xf32>
    %203 = arith.subf %199, %202 : vector<8x8xf32>
    %204 = math.exp %203 : vector<8x8xf32>
    %cst_75 = arith.constant dense<0.000000e+00> : vector<8xf32>
    %205 = vector.multi_reduction <add>, %204, %cst_75 [1] : vector<8x8xf32> to vector<8xf32>
    %206 = vector.shape_cast %205 : vector<8xf32> to vector<8x1xf32>
    %207 = tpu.reciprocal %206 {approx = true} : vector<8x1xf32> -> vector<8x1xf32>
    %208 = vector.broadcast %207 : vector<8x1xf32> to vector<8x8xf32>
    %209 = arith.mulf %204, %208 : vector<8x8xf32>
    %cst_76 = arith.constant dense<0.000000e+00> : vector<8x8xf32>
    %210 = tpu.matmul %209, %197, %cst_76 {dimension_numbers = #tpu.dot_dimension_numbers<[1], [0], [0], [1], [0, 0, 1, 1], [], []>} : vector<8x8xf32>, vector<8x8xf32>, vector<8x8xf32> -> vector<8x8xf32>
    %211 = tpu.concatenate %162, %178, %194, %210 in 1 : vector<8x8xf32>, vector<8x8xf32>, vector<8x8xf32>, vector<8x8xf32> -> vector<8x32xf32>
    %c288 = arith.constant 288 : index
    %c0_77 = arith.constant 0 : index
    %212 = vector.load %arg6[%c288, %c0_77] : memref<320x32xf32, #tpu.memory_space<vmem>>, vector<32x32xf32>
    %cst_78 = arith.constant dense<0.000000e+00> : vector<8x32xf32>
    %213 = tpu.matmul %211, %212, %cst_78 {dimension_numbers = #tpu.dot_dimension_numbers<[1], [0], [0], [1], [0, 0, 1, 1], [], []>} : vector<8x32xf32>, vector<32x32xf32>, vector<8x32xf32> -> vector<8x32xf32>
    %c10 = arith.constant 10 : index
    %c0_79 = arith.constant 0 : index
    %214 = vector.load %arg7[%c10, %c0_79] : memref<13x32xf32, #tpu.memory_space<vmem>>, vector<1x32xf32>
    %215 = vector.broadcast %214 : vector<1x32xf32> to vector<8x32xf32>
    %216 = arith.addf %213, %215 : vector<8x32xf32>
    %217 = arith.addf %216, %123 : vector<8x32xf32>
    %c11 = arith.constant 11 : index
    %c0_80 = arith.constant 0 : index
    %218 = vector.load %arg7[%c11, %c0_80] : memref<13x32xf32, #tpu.memory_space<vmem>>, vector<1x32xf32>
    %c12 = arith.constant 12 : index
    %c0_81 = arith.constant 0 : index
    %219 = vector.load %arg7[%c12, %c0_81] : memref<13x32xf32, #tpu.memory_space<vmem>>, vector<1x32xf32>
    %cst_82 = arith.constant dense<0.000000e+00> : vector<8xf32>
    %220 = vector.multi_reduction <add>, %217, %cst_82 [1] : vector<8x32xf32> to vector<8xf32>
    %221 = vector.shape_cast %220 : vector<8xf32> to vector<8x1xf32>
    %cst_83 = arith.constant 3.200000e+01 : f32
    %222 = vector.broadcast %cst_83 : f32 to vector<8x1xf32>
    %223 = arith.divf %221, %222 : vector<8x1xf32>
    %224 = vector.broadcast %223 : vector<8x1xf32> to vector<8x32xf32>
    %225 = arith.subf %217, %224 : vector<8x32xf32>
    %226 = arith.mulf %225, %225 : vector<8x32xf32>
    %cst_84 = arith.constant dense<0.000000e+00> : vector<8xf32>
    %227 = vector.multi_reduction <add>, %226, %cst_84 [1] : vector<8x32xf32> to vector<8xf32>
    %228 = vector.shape_cast %227 : vector<8xf32> to vector<8x1xf32>
    %cst_85 = arith.constant 3.200000e+01 : f32
    %229 = vector.broadcast %cst_85 : f32 to vector<8x1xf32>
    %230 = arith.divf %228, %229 : vector<8x1xf32>
    %231 = vector.broadcast %223 : vector<8x1xf32> to vector<8x32xf32>
    %232 = arith.subf %217, %231 : vector<8x32xf32>
    %cst_86 = arith.constant 9.99999974E-6 : f32
    %233 = vector.broadcast %cst_86 : f32 to vector<8x1xf32>
    %234 = arith.addf %230, %233 : vector<8x1xf32>
    %235 = math.rsqrt %234 : vector<8x1xf32>
    %236 = vector.broadcast %235 : vector<8x1xf32> to vector<8x32xf32>
    %237 = arith.mulf %232, %236 : vector<8x32xf32>
    %238 = vector.broadcast %218 : vector<1x32xf32> to vector<8x32xf32>
    %239 = arith.mulf %237, %238 : vector<8x32xf32>
    %240 = vector.broadcast %219 : vector<1x32xf32> to vector<8x32xf32>
    %241 = arith.addf %239, %240 : vector<8x32xf32>
    %c0_87 = arith.constant 0 : index
    %c0_88 = arith.constant 0 : index
    %242 = vector.load %arg8[%c0_87, %c0_88] : memref<8x32xf32, #tpu.memory_space<vmem>>, vector<8x32xf32>
    tpu.vector_store %arg8[%c0_87, %c0_88], %241 {strides = array<i32>} : memref<8x32xf32, #tpu.memory_space<vmem>>, vector<8x32xf32>,
    return
  }
  func.func @transform_0(%arg0: i32) -> (i32, i32) {
    %c0_i32 = arith.constant 0 : i32
    %c0_i32_0 = arith.constant 0 : i32
    return %arg0, %c0_i32 : i32, i32
  }
  func.func @transform_1(%arg0: i32) -> (i32, i32) {
    %c0_i32 = arith.constant 0 : i32
    %c0_i32_0 = arith.constant 0 : i32
    return %arg0, %c0_i32 : i32, i32
  }
  func.func @transform_2(%arg0: i32) -> (i32, i32) {
    %c0_i32 = arith.constant 0 : i32
    %c0_i32_0 = arith.constant 0 : i32
    return %arg0, %c0_i32 : i32, i32
  }
  func.func @transform_3(%arg0: i32) -> (i32, i32) {
    %c0_i32 = arith.constant 0 : i32
    %c0_i32_0 = arith.constant 0 : i32
    return %arg0, %c0_i32 : i32, i32
  }
  func.func @transform_4(%arg0: i32) -> (i32, i32) {
    %c0_i32 = arith.constant 0 : i32
    %c0_i32_0 = arith.constant 0 : i32
    return %arg0, %c0_i32 : i32, i32
  }
  func.func @transform_5(%arg0: i32) -> (i32, i32) {
    %c0_i32 = arith.constant 0 : i32
    %c0_i32_0 = arith.constant 0 : i32
    %c0_i32_1 = arith.constant 0 : i32
    return %c0_i32, %c0_i32_0 : i32, i32
  }
  func.func @transform_6(%arg0: i32) -> (i32, i32) {
    %c0_i32 = arith.constant 0 : i32
    %c0_i32_0 = arith.constant 0 : i32
    %c0_i32_1 = arith.constant 0 : i32
    return %c0_i32, %c0_i32_0 : i32, i32
  }
  func.func @transform_7(%arg0: i32) -> (i32, i32) {
    %c0_i32 = arith.constant 0 : i32
    %c0_i32_0 = arith.constant 0 : i32
    return %arg0, %c0_i32 : i32, i32
  }
}

</mosaic_0001>

<bundles_post_ra>
// kernel: tpu_custom_call.1
= control target key start
LH: loop header
LB: loop body
LE: loop exit
PB: predicated region body
PF: predicated region fallthrough
CT: control target
= control target key end

     0   :  { %12 = vsyncpa [#allocation3], 0  ;;  %s3851_s0 = inlined_call_operand.vmem [shape: f32[16,64], index: 0, kind: input, shape index: {}]   ;;  %s3852_s1 = inlined_call_operand.vmem [shape: f32[32,48], index: 1, kind: input, shape index: {}]   ;;  %s3853_s2 = inlined_call_operand.vmem [shape: f32[32,48], index: 2, kind: input, shape index: {}]   ;;  %s3854_s3 = inlined_call_operand.vmem [shape: f32[16,16], index: 3, kind: input, shape index: {}]   ;;  %s3855_s4 = inlined_call_operand.vmem [shape: f32[16,16], index: 4, kind: input, shape index: {}]   ;;  %s3856_s5 = inlined_call_operand.vmem [shape: f32[320,32], index: 5, kind: input, shape index: {}]   ;;  %s3857_s6 = inlined_call_operand.vmem [shape: f32[13,32], index: 6, kind: input, shape index: {}]   ;;  %s3858_s7 = inlined_call_operand.hbm [shape: f32[16,32], index: 7, kind: output, shape index: {}]  }
   0x1   :  { %14 = vsyncpa [#allocation3 + $0x1], 0  ;;  %s3357_s24 = smov 0   ;;  %s3359_s25 = smov 0  }
   0x2   :  { %s3361_s26 = smov 0   ;;  %s3363_s27 = smov 0  }
   0x3 LB: > { %s3378_s28 = sadd.s32 4294967295, %s3304_s27   ;;  %s2671_s29 = sadd.s32 4294967294, %s3304_s27   ;;  %s3304_s27 = sphi %s3363_s27, %s3871_s27   ;;  %s3300_s26 = sphi %s3361_s26, %s3870_s26   ;;  %s3296_s25 = sphi %s3359_s25, %s3869_s25   ;;  %s3292_s24 = sphi %s3357_s24, %s3868_s24  }
   0x4   : > { %s3382_s30 = sadd.s32 1, %s3304_s27   ;;  %s199_s8 = sadd.s32 1, %s3300_s26 }
   0x5   : > { %s196_s9 = ssub.s32 %s3304_s27, %s3382_s30  ;;  %p209_p0 = scmp.ne.s32.totalorder %s3300_s26, %s3296_s25 }
   0x6   : > { %p197_p1 = scmp.eq.s32.totalorder %s196_s9, 0  ;;  %p210_p2 = scmp.eq.s32.totalorder %s3378_s28, 1 }
   0x7   : > { %p215_p3 = scmp.ne.s32.totalorder %s3296_s25, %s3292_s24  ;;  %p216_p4 = scmp.eq.s32.totalorder %s2671_s29, 1 }
   0x8   : > { %s3393_s10 = scalar_select %p197_p1, %s3300_s26, %s199_s8  }
   0x9   : > { %p3395_p5 = por %p210_p2, %p209_p0  ;;  %p3399_p6 = por %p216_p4, %p215_p3 }
   0xa   : > { %p2674_p7 = scmp.ge.s32.totalorder %s3304_s27, 1  ;;  %p279_p8 = scmp.lt.s32.totalorder %s3304_s27, 3 }
   0xc   : > { %p280_p9 = pnand %p2674_p7, %p279_p8 }
   0xd   : > { %v353_v0 = vld [vmem:[%s3856_s5] sm:$0xff] (!%p280_p9)  ;;  %v354_v1 = vld [vmem:[%s3856_s5 + $0x8] sm:$0xff] (!%p280_p9)  ;;  %v355_v2 = vld [vmem:[%s3856_s5 + $0x10] sm:$0xff] (!%p280_p9)  ;;  %v3306_v3 = vmov (!%p280_p9), 0.0|0.0   ;;  %vm3307_vm0 = vmmov (!%p280_p9), 0   ;;  %v3308_v6 = vmov (!%p280_p9), 0.0   ;;  %v712_v59 = vlaneseq (!%p280_p9) }
   0xe   : > { %283 = sbr.rel (%p280_p9) target bundleno = 5255 (0x1487), region = 48  ;;  %3033 = vmatprep.subr.bf16.mxu0 (!%p280_p9), %v3306_v3  ;;  %v3034_v4 = vpack.c.bf16 (!%p280_p9), %v354_v1, %v353_v0  ;;  %v356_v5 = vld [vmem:[%s3856_s5 + $0x18] sm:$0xff] (!%p280_p9)  ;;  %2846 = vmatprep.mubr.msk.f32.mxu0 (!%p280_p9), %vm3307_vm0, %v3308_v6  ;;  %p328_p10 = scmp.lt.s32.totalorder (!%p280_p9), %s3378_s28, 1  ;;  %v440_v7 = vld [vmem:[%s3856_s5 + $0x40] sm:$0xff] (!%p280_p9)  ;;  %v441_v9 = vld [vmem:[%s3856_s5 + $0x48] sm:$0xff] (!%p280_p9)  ;;  %vm366_vm1 = vcmask (!%p280_p9), 523264  }
   0xf   : > { %3045 = vmatprep.subr.bf16.mxu1 (!%p280_p9), %v3306_v3  ;;  %2857 = vmatprep.mubr.msk.f32.mxu1 (!%p280_p9), %vm3307_vm0, %v3308_v6  ;;  %v3037_v8 = vpack.c.bf16 (!%p280_p9), %v356_v5, %v355_v2  ;;  %v442_v10 = vld [vmem:[%s3856_s5 + $0x50] sm:$0xff] (!%p280_p9)  ;;  %v443_v11 = vld [vmem:[%s3856_s5 + $0x58] sm:$0xff] (!%p280_p9)  ;;  %v357_v12 = vld [vmem:[%s3856_s5 + $0x20] sm:$0xff] (!%p280_p9)  ;;  %v3046_v14 = vpack.c.bf16 (!%p280_p9), %v441_v9, %v440_v7  ;;  %s2677_s18 = sshll.u32 (!%p280_p9), %s3378_s28, 1  ;;  %vm449_vm2 = vcmask (!%p280_p9), 261120   ;;  %vm536_vm3 = vcmask (!%p280_p9), 392192  }
  0x10   : > { %3035 = vmatpush3.bf16.msra.mxu0 (!%p280_p9), %v3034_v4  ;;  %v358_v13 = vld [vmem:[%s3856_s5 + $0x28] sm:$0xff] (!%p280_p9)  ;;  %v3049_v15 = vpack.c.bf16 (!%p280_p9), %v443_v11, %v442_v10  ;;  %v359_v17 = vld [vmem:[%s3856_s5 + $0x30] sm:$0xff] (!%p280_p9)  ;;  %v360_v18 = vld [vmem:[%s3856_s5 + $0x38] sm:$0xff] (!%p280_p9)  ;;  %p333_p11 = scmp.lt.s32.totalorder (!%p280_p9), %s2677_s18, 3  ;;  %vm716_vm4 = vcmask (!%p280_p9), 64512   ;;  %v3553_v60 = vand.u32 (!%p280_p9), 127, %v712_v59 }
  0x11   : > { %3036 = vmatprep.subr.bf16.mxu0 (!%p280_p9), %v3306_v3  ;;  %3047 = vmatpush3.bf16.msra.mxu1 (!%p280_p9), %v3046_v14  ;;  %v3040_v16 = vpack.c.bf16 (!%p280_p9), %v358_v13, %v357_v12  ;;  %v3043_v19 = vpack.c.bf16 (!%p280_p9), %v360_v18, %v359_v17  ;;  %v525_v21 = vld [vmem:[%s3856_s5 + $0x60] sm:$0xff] (!%p280_p9)  ;;  %v526_v22 = vld [vmem:[%s3856_s5 + $0x68] sm:$0xff] (!%p280_p9)  ;;  %v527_v25 = vld [vmem:[%s3856_s5 + $0x70] sm:$0xff] (!%p280_p9)  ;;  %v3310_v61 = vmov (!%p280_p9), -1e+30   ;;  %vm796_vm7 = vcmask (!%p280_p9), 130048  }
  0x12   : > { %3048 = vmatprep.subr.bf16.mxu1 (!%p280_p9), %v3306_v3  ;;  %v3051_v23 = vpack.c.bf16 (!%p280_p9), %v526_v22, %v525_v21  ;;  %v2683_v24 = vld [vmem:[%s3857_s6] ss:$0 sm:$0xff] (!%p280_p9)  ;;  %v528_v26 = vld [vmem:[%s3856_s5 + $0x78] sm:$0xff] (!%p280_p9)  ;;  %v530_v33 = vld [vmem:[%s3856_s5 + $0x88] sm:$0xff] (!%p280_p9)  ;;  %vm714_vm6 = vcmp.lt.s32.totalorder (!%p280_p9), %v3553_v60, 10  ;;  %s3311_s20 = smov (!%p280_p9), 112  }
  0x13   : > { %v3055_v30 = vpack.c.bf16 (!%p280_p9), %v528_v26, %v527_v25  ;;  %v529_v32 = vld [vmem:[%s3856_s5 + $0x80] sm:$0xff] (!%p280_p9)  ;;  %vm3503_vm5 = vmpackc.low (!%p280_p9), %vm716_vm4, %vm716_vm4  ;;  %v620_v48 = vld [vmem:[%s3856_s5 + $0x90] sm:$0xff] (!%p280_p9)  ;;  %v3557_v62 = vsel (!%p280_p9), %vm714_vm6, 0.0, %v3310_v61  ;;  %s3312_s21 = smov (!%p280_p9), 104   ;;  %s3313_s22 = smov (!%p280_p9), 8   ;;  %vm1413_vm8 = vcmask (!%p280_p9), 195584  }
  0x14   : > { %3038 = vmatpush3.bf16.msra.mxu0 (!%p280_p9), %v3037_v8  ;;  %v3059_v34 = vpack.c.bf16 (!%p280_p9), %v530_v33, %v529_v32  ;;  %v2687_v38 = vld [vmem:[%s3857_s6 + $0x2] ss:$0 sm:$0xff] (!%p280_p9)  ;;  %v2685_v46 = vld [vmem:[%s3857_s6 + $0x1] ss:$0 sm:$0xff] (!%p280_p9)  ;;  %v621_v49 = vld [vmem:[%s3856_s5 + $0x98] sm:$0xff] (!%p280_p9)  ;;  %s3314_s23 = smov (!%p280_p9), 16  }
  0x15   : > { %s329_s19 = scalar_select %p328_p10, %s3378_s28, 1  ;;  %3039 = vmatprep.subr.bf16.mxu0 %v3306_v3  ;;  %3050 = vmatpush3.bf16.msra.mxu1 %v3049_v15  ;;  %v622_v50 = vld [vmem:[%s3856_s5 + $0xa0] sm:$0xff]  ;;  %v3063_v51 = vpack.c.bf16 %v621_v49, %v620_v48  ;;  %v623_v52 = vld [vmem:[%s3856_s5 + $0xa8] sm:$0xff]  ;;  %v624_v54 = vld [vmem:[%s3856_s5 + $0xb0] sm:$0xff]  ;;  %vm1768_vm9 = vcmp.lt.s32.totalorder %v3553_v60, 6 }
  0x16   : > { %3052 = vmatprep.subr.bf16.mxu1 %v3051_v23  ;;  %s3873_s18 = smov (!%p333_p11, %s2677_s18), 3  ;;  %v3067_v53 = vpack.c.bf16 %v623_v52, %v622_v50  ;;  %v625_v55 = vld [vmem:[%s3856_s5 + $0xb8] sm:$0xff]  ;;  %v2690_v12 = vld [vmem:[%s3857_s6 + $0x3] ss:$0 sm:$0xff] }
  0x17   : > { %s3452_s29 = sshll.u32 %s329_s19, 3  ;;  %s2678_s19 = sshll.u32 %s3873_s18, 3  ;;  %v3071_v57 = vpack.c.bf16 %v625_v55, %v624_v54 }
  0x18   : > { %3041 = vmatpush3.bf16.msra.mxu0 %v3040_v16  ;;  %s331_s13 = scalar_lea.vmem %s3851_s0, %s3452_s29  ;;  %s336_s15 = scalar_lea.vmem %s3852_s1, %s2678_s19 }
  0x19   : > { %3042 = vmatprep.subr.bf16.mxu0 %v3306_v3  ;;  %v352_v20 = vld [vmem:[%s331_s13] sm:$0xff]  ;;  %v524_v35 = vld [vmem:[%s336_s15 + $0x8] sm:$0xff]  ;;  %s3859_s13 = smov 120   ;;  %s342_s8 = scalar_lea.vmem %s3853_s2, %s2678_s19 }
  0x1a   : > { %v523_v31 = vld [vmem:[%s336_s15] sm:$0xff]  ;;  %v619_v58 = vld [vmem:[%s342_s8 + $0x8] sm:$0xff]  ;;  %s347_s14 = scalar_lea.vmem %s3854_s3, %s3452_s29  ;;  %s351_s9 = scalar_lea.vmem %s3855_s4, %s3452_s29 }
  0x1b   : > { %v618_v56 = vld [vmem:[%s342_s8] sm:$0xff]  ;;  %s3861_s8 = smov 24   ;;  %s3867_s19 = smov 24  }
  0x1c   : > { %3044 = vmatpush3.bf16.msra.mxu0 %v3043_v19  ;;  %s2736_s15 = sshll.u32 %s3378_s28, 7  ;;  %s3316_s28 = smov [#allocation2]  }
  0x1d   : > { %3064 = vmatprep.subr.bf16.mxu0 %v3063_v51 }
  0x1f   : > { %2847 = vmatmul.mubr.msk.f32.vlgmr.msra.gmra.mrb[0].mxu0 %vm366_vm1, %v352_v20 }
  0x20   : > { %2887 = vmatprep.mubr.msk.f32.mxu0 %vm536_vm3, %v618_v56  ;;  %3066 = vmatpush3.bf16.msra.mxu0 %v3063_v51 }
  0x21   : > { %3068 = vmatprep.subr.bf16.mxu0 %v3067_v53 }
  0x24   : > { %3070 = vmatpush3.bf16.msra.mxu0 %v3067_v53 }
  0x25   : > { %3072 = vmatprep.subr.bf16.mxu0 %v3071_v57 }
  0x28   : > { %3074 = vmatpush3.bf16.msra.mxu0 %v3071_v57 }
  0x29   : > { %3086 = vmatprep.subr.bf16.mxu0 %v3306_v3 }
  0x2b   : > { %2888 = vmatmul.mubr.msk.f32.vlgmr.msra.gmra.mrb[2].mxu0 %vm536_vm3, %v619_v58 }
  0x2c   : > { %2915 = vmatprep.mubr.msk.f32.mxu0 %vm3307_vm0, %v3308_v6 }
  0xf2   : > { %v436_v27 = vpop.f32.mrb[0].mxu0 }
  0xf3   : > { %v3483_v28 = vadd.f32 %v2683_v24, %v436_v27  ;;  %v2848_v29 = vpop.f32.mrb[1].mxu0 }
  0xf5   : > { %2858 = vmatmul.mubr.msk.f32.vlgmr.msra.gmra.mrb[0].mxu1 %vm449_vm2, %v3483_v28 }
  0xf6   : > { %3054 = vmatpush3.bf16.msra.mxu1 %v3051_v23  ;;  %2872 = vmatprep.mubr.msk.f32.mxu1 %vm536_vm3, %v523_v31 }
  0xf7   : > { %3056 = vmatprep.subr.bf16.mxu1 %v3055_v30 }
  0xfa   : > { %3058 = vmatpush3.bf16.msra.mxu1 %v3055_v30 }
  0xfb   : > { %3060 = vmatprep.subr.bf16.mxu1 %v3059_v34 }
  0xfe   : > { %3062 = vmatpush3.bf16.msra.mxu1 %v3059_v34  ;;  %v2889_v4 = vpop.f32.mrb[2].mxu0 }
  0xff   : > { %3075 = vmatprep.subr.bf16.mxu1 %v3306_v3  ;;  %v703_v5 = vpop.f32.mrb[3].mxu0  ;;  %v709_v13 = vadd.f32 %v2889_v4, %v2690_v12 }
 0x100   : > { %v704_v14 = vadd.f32 %v2690_v12, %v703_v5 }
 0x101   : > { %2873 = vmatmul.mubr.msk.f32.vlgmr.msra.gmra.mrb[2].mxu1 %vm536_vm3, %v524_v35 }
 0x102   : > { %2894 = vmatprep.mubr.msk.f32.mxu1 %vm3307_vm0, %v3308_v6  ;;  %v3080_v15 = vpack.c.bf16 %v709_v13, %v704_v14  ;;  %v3565_v16 = vpack.i.bf16 %v709_v13, %v704_v14 }
 0x1c8   : > { %v519_v36 = vpop.f32.mrb[0].mxu1 }
 0x1c9   : > { %v2859_v37 = vpop.f32.mrb[1].mxu1  ;;  %v3517_v47 = vadd.f32 %v2685_v46, %v519_v36 }
 0x1d4   : > { %v2874_v39 = vpop.f32.mrb[2].mxu1 }
 0x1d5   : > { %v615_v40 = vadd.f32 %v2874_v39, %v2687_v38  ;;  %v609_v41 = vpop.f32.mrb[3].mxu1 }
 0x1d6   : > { %v610_v42 = vadd.f32 %v2687_v38, %v609_v41 }
 0x1d8   : > { %v3076_v44 = vpack.c.bf16 %v615_v40, %v610_v42  ;;  %v3507_v45 = vpack.i.bf16 %v615_v40, %v610_v42 }
 0x1da   : > { %3177 = vrot.lane.b32.xlu1 %v3507_v45, %s3859_s13  ;;  %3078 = vmatpush3.bf16.xpose.msk.msra.mxu1 %vm3503_vm5, %v3076_v44 }
 0x1db   : > { %3079 = vmatprep.subr.bf16.mxu1 %v3306_v3 }
 0x1de   : > { %881 = vrot.lane.b32.xlu1 %v3517_v47, %s3859_s13  ;;  %s3866_s13 = smov 120  }
 0x1e1   : > { %2895 = vmatmul.mubr.msk.f32.vlgmr.msra.gmra.mrb[4].mxu1 %vm716_vm4, %v3517_v47 }
 0x1e2   : > { %2901 = vmatprep.mubr.msk.f32.mxu1 %vm3307_vm0, %v3308_v6  ;;  %3081 = vmatpush3.bf16.msra.mxu1 %v3080_v15 }
 0x1e3   : > { %3082 = vmatprep.subr.bf16.mxu1 %v3306_v3 }
 0x24c   : > { %v3178_v18 = vpop.permute.xlu1 %3177 }
 0x24d   : > { %v3180_v19 = vunpack.i.h.bf16 %v3178_v18  ;;  %v3179_v20 = vunpack.i.l.bf16 %v3178_v18 }
 0x24f   : > { %v3083_v23 = vpack.c.bf16 %v3180_v19, %v3179_v20 }
 0x250   : > { %v882_v24 = vpop.permute.xlu1 %881 }
 0x2b4   : > { %v792_v63 = vpop.f32.mrb[4].mxu1 }
 0x2b5   : > { %v793_v0 = vadd.f32 %v792_v63, %v3557_v62  ;;  %v2896_v1 = vpop.f32.mrb[5].mxu1 }
 0x2b7   : > { %v797_v2 = vsel %vm796_vm7, %v793_v0, -inf }
 0x2b8   : > { %798 = vmax.xlane.f32.xlu0 %v797_v2 }
 0x345   : > { %v799_v7 = vpop.xlane.xlu0 %798 }
 0x346   : > { %v800_v8 = vsub.f32 %v793_v0, %v799_v7 }
 0x348   : > { %v801_v9 = vmul.f32 1.442695, %v800_v8 }
 0x34a   : > { %3206 = vpow2.f32 %v801_v9 }
 0x354   : > { %v3207_v10 = vpop.eup %3206 }
 0x355   : > { %v803_v11 = vsel %vm796_vm7, %v3207_v10, 0.0 }
 0x356   : > { %804 = vadd.xlane.f32.xlu0 %v803_v11 }
 0x3e3   : > { %v805_v17 = vpop.xlane.xlu0 %804 }
 0x3e4   : > { %3208 = vrcp.f32 %v805_v17 }
 0x3ee   : > { %v3209_v21 = vpop.eup %3208 }
 0x3ef   : > { %v807_v22 = vmul.f32 %v3209_v21, %v3207_v10 }
 0x3f1   : > { %2902 = vmatmul.mubr.msk.f32.vlgmr.msra.gmra.mrb[6].mxu1 %vm796_vm7, %v807_v22 }
 0x3f2   : > { %3085 = vmatpush3.bf16.xpose.msk.msra.mxu1 %vm3503_vm5, %v3083_v23  ;;  %2908 = vmatprep.mubr.msk.f32.mxu1 %vm3307_vm0, %v3308_v6 }
 0x3f3   : > { %3093 = vmatprep.subr.bf16.mxu1 %v3306_v3 }
 0x3f9   : > { %2909 = vmatmul.mubr.msk.f32.vlgmr.msra.gmra.mrb[8].mxu1 %vm716_vm4, %v882_v24 }
 0x3fa   : > { %2929 = vmatprep.mubr.msk.f32.mxu1 %vm3307_vm0, %v3308_v6 }
 0x4c4   : > { %v3577_v25 = vpop.f32.mrb[6].mxu1 }
 0x4c5   : > { %v2903_v26 = vpop.f32.mrb[7].mxu1 }
 0x4cc   : > { %v959_v27 = vpop.f32.mrb[8].mxu1 }
 0x4cd   : > { %v960_v29 = vadd.f32 %v959_v27, %v3557_v62  ;;  %v2910_v30 = vpop.f32.mrb[9].mxu1 }
 0x4cf   : > { %v963_v31 = vsel %vm796_vm7, %v960_v29, -inf }
 0x4d0   : > { %964 = vmax.xlane.f32.xlu0 %v963_v31 }
 0x4e6   : > { %3182 = vrot.lane.b32.xlu0 %v3565_v16, %s3866_s13 }
 0x4ea   : > { %3187 = vrot.lane.b32.xlu0 %v3507_v45, %s3311_s20 }
 0x4ee   : > { %1055 = vrot.lane.b32.xlu0 %v3517_v47, %s3311_s20 }
 0x55d   : > { %v965_v32 = vpop.xlane.xlu0 %964 }
 0x55e   : > { %v966_v33 = vsub.f32 %v960_v29, %v965_v32  ;;  %v1415_v32 = vld [vmem:[%s3856_s5 + $0xc0] sm:$0xff] }
 0x560   : > { %v967_v34 = vmul.f32 1.442695, %v966_v33  ;;  %v1416_v33 = vld [vmem:[%s3856_s5 + $0xc8] sm:$0xff] }
 0x561   : > { %v3183_v35 = vpop.permute.xlu0 %3182 }
 0x562   : > { %3210 = vpow2.f32 %v967_v34  ;;  %v3185_v36 = vunpack.i.h.bf16 %v3183_v35  ;;  %v3184_v37 = vunpack.i.l.bf16 %v3183_v35  ;;  %v1417_v34 = vld [vmem:[%s3856_s5 + $0xd0] sm:$0xff]  ;;  %v3104_v35 = vpack.c.bf16 %v1416_v33, %v1415_v32 }
 0x564   : > { %v3087_v38 = vpack.c.bf16 %v3185_v36, %v3184_v37  ;;  %v1418_v36 = vld [vmem:[%s3856_s5 + $0xd8] sm:$0xff] }
 0x565   : > { %v3188_v48 = vpop.permute.xlu0 %3187  ;;  %v3107_v37 = vpack.c.bf16 %v1418_v36, %v1417_v34  ;;  %v1769_v34 = vsel %vm1768_vm9, 0.0, %v3310_v61 }
 0x566   : > { %3088 = vmatpush3.bf16.msra.mxu0 %v3087_v38  ;;  %v3190_v50 = vunpack.i.h.bf16 %v3188_v48  ;;  %v3189_v51 = vunpack.i.l.bf16 %v3188_v48 }
 0x567   : > { %3089 = vmatprep.subr.bf16.mxu0 %v3306_v3 }
 0x568   : > { %v3090_v54 = vpack.c.bf16 %v3190_v50, %v3189_v51 }
 0x56c   : > { %v3211_v39 = vpop.eup %3210 }
 0x56d   : > { %v969_v40 = vsel %vm796_vm7, %v3211_v39, 0.0 }
 0x56e   : > { %970 = vadd.xlane.f32.xlu1 %v969_v40 }
 0x57f   : > { %3192 = vrot.lane.b32.xlu1 %v3565_v16, %s3311_s20 }
 0x583   : > { %3197 = vrot.lane.b32.xlu1 %v3507_v45, %s3312_s21  ;;  %v1056_v45 = vpop.permute.xlu0 %1055 }
 0x5fb   : > { %v971_v41 = vpop.xlane.xlu1 %970 }
 0x5fc   : > { %3212 = vrcp.f32 %v971_v41 }
 0x5ff   : > { %v3193_v42 = vpop.permute.xlu1 %3192 }
 0x600   : > { %v3195_v44 = vunpack.i.h.bf16 %v3193_v42  ;;  %v3194_v46 = vunpack.i.l.bf16 %v3193_v42 }
 0x602   : > { %v3094_v49 = vpack.c.bf16 %v3195_v44, %v3194_v46 }
 0x603   : > { %v3198_v7 = vpop.permute.xlu1 %3197 }
 0x604   : > { %3095 = vmatpush3.bf16.msra.mxu1 %v3094_v49  ;;  %v3200_v9 = vunpack.i.h.bf16 %v3198_v7  ;;  %v3199_v10 = vunpack.i.l.bf16 %v3198_v7  ;;  %v2709_v49 = vld [vmem:[%s3857_s6 + $0x4] ss:$0 sm:$0xff] }
 0x605   : > { %3096 = vmatprep.subr.bf16.mxu1 %v3306_v3 }
 0x606   : > { %v3213_v52 = vpop.eup %3212  ;;  %v3097_v13 = vpack.c.bf16 %v3200_v9, %v3199_v10 }
 0x607   : > { %v973_v53 = vmul.f32 %v3213_v52, %v3211_v39 }
 0x609   : > { %2916 = vmatmul.mubr.msk.f32.vlgmr.msra.gmra.mrb[4].mxu0 %vm796_vm7, %v973_v53 }
 0x60a   : > { %3092 = vmatpush3.bf16.xpose.msk.msra.mxu0 %vm3503_vm5, %v3090_v54  ;;  %2922 = vmatprep.mubr.msk.f32.mxu0 %vm3307_vm0, %v3308_v6 }
 0x60b   : > { %3100 = vmatprep.subr.bf16.mxu0 %v3306_v3 }
 0x611   : > { %2923 = vmatmul.mubr.msk.f32.vlgmr.msra.gmra.mrb[6].mxu0 %vm716_vm4, %v1056_v45 }
 0x612   : > { %2943 = vmatprep.mubr.msk.f32.mxu0 %vm3307_vm0, %v3308_v6 }
 0x6dc   : > { %v1051_v55 = vpop.f32.mrb[4].mxu0 }
 0x6dd   : > { %v2917_v56 = vpop.f32.mrb[5].mxu0 }
 0x6e4   : > { %v1133_v57 = vpop.f32.mrb[6].mxu0 }
 0x6e5   : > { %v1134_v58 = vadd.f32 %v1133_v57, %v3557_v62  ;;  %v2924_v59 = vpop.f32.mrb[7].mxu0 }
 0x6e6   : > { %v1608_v59 = vld [vmem:[%s3856_s5 + $0x108] sm:$0xff] }
 0x6e7   : > { %v1137_v63 = vsel %vm796_vm7, %v1134_v58, -inf }
 0x6e8   : > { %1138 = vmax.xlane.f32.xlu0 %v1137_v63 }
 0x775   : > { %v1139_v0 = vpop.xlane.xlu0 %1138 }
 0x776   : > { %v1140_v1 = vsub.f32 %v1134_v58, %v1139_v0  ;;  %v1607_v58 = vld [vmem:[%s3856_s5 + $0x100] sm:$0xff] }
 0x777   : > { %v3116_v63 = vpack.c.bf16 %v1608_v59, %v1607_v58  ;;  %v1524_v0 = vld [vmem:[%s3856_s5 + $0xe0] sm:$0xff] }
 0x778   : > { %v1141_v2 = vmul.f32 1.442695, %v1140_v1  ;;  %v1525_v1 = vld [vmem:[%s3856_s5 + $0xe8] sm:$0xff] }
 0x77a   : > { %3214 = vpow2.f32 %v1141_v2  ;;  %v3110_v2 = vpack.c.bf16 %v1525_v1, %v1524_v0 }
 0x784   : > { %v3215_v4 = vpop.eup %3214 }
 0x785   : > { %v1143_v5 = vsel %vm796_vm7, %v3215_v4, 0.0 }
 0x786   : > { %1144 = vadd.xlane.f32.xlu1 %v1143_v5  ;;  %v1527_v5 = vld [vmem:[%s3856_s5 + $0xf8] sm:$0xff] }
 0x797   : > { %1227 = vrot.lane.b32.xlu1 %v3517_v47, %s3312_s21 }
 0x813   : > { %v1145_v8 = vpop.xlane.xlu1 %1144 }
 0x814   : > { %3216 = vrcp.f32 %v1145_v8 }
 0x817   : > { %v1228_v14 = vpop.permute.xlu1 %1227 }
 0x81e   : > { %v3217_v11 = vpop.eup %3216 }
 0x81f   : > { %v1147_v12 = vmul.f32 %v3217_v11, %v3215_v4  ;;  %v1526_v4 = vld [vmem:[%s3856_s5 + $0xf0] sm:$0xff] }
 0x820   : > { %v3113_v7 = vpack.c.bf16 %v1527_v5, %v1526_v4 }
 0x821   : > { %2930 = vmatmul.mubr.msk.f32.vlgmr.msra.gmra.mrb[10].mxu1 %vm796_vm7, %v1147_v12  ;;  %v2711_v12 = vld [vmem:[%s3857_s6 + $0x5] ss:$0 sm:$0xff] }
 0x822   : > { %3099 = vmatpush3.bf16.xpose.msk.msra.mxu1 %vm3503_vm5, %v3097_v13  ;;  %2936 = vmatprep.mubr.msk.f32.mxu1 %vm3307_vm0, %v3308_v6 }
 0x823   : > { %3109 = vmatprep.subr.bf16.mxu1 %v3306_v3 }
 0x829   : > { %2937 = vmatmul.mubr.msk.f32.vlgmr.msra.gmra.mrb[12].mxu1 %vm716_vm4, %v1228_v14  ;;  %v2712_v14 = vld [vmem:[%s3857_s6 + $0x6] ss:$0 sm:$0xff] }
 0x82a   : > { %2965 = vmatprep.mubr.msk.f32.mxu1 %vm3307_vm0, %v3308_v6  ;;  %3111 = vmatpush3.bf16.msra.mxu1 %v3110_v2 }
 0x82b   : > { %3112 = vmatprep.subr.bf16.mxu1 %v3306_v3 }
 0x82e   : > { %3114 = vmatpush3.bf16.msra.mxu1 %v3113_v7 }
 0x82f   : > { %3118 = vmatprep.subr.bf16.mxu1 %v3306_v3 }
 0x8f4   : > { %v1223_v47 = vpop.f32.mrb[10].mxu1 }
 0x8f5   : > { %v2931_v15 = vpop.f32.mrb[11].mxu1 }
 0x8fc   : > { %v1305_v17 = vpop.f32.mrb[12].mxu1 }
 0x8fd   : > { %v1306_v18 = vadd.f32 %v1305_v17, %v3557_v62  ;;  %v2938_v19 = vpop.f32.mrb[13].mxu1  ;;  %v2715_v17 = vld [vmem:[%s3857_s6 + $0x8] ss:$0 sm:$0xff] }
 0x8ff   : > { %v1309_v43 = vsel %vm796_vm7, %v1306_v18, -inf }
 0x900   : > { %1310 = vmax.xlane.f32.xlu0 %v1309_v43 }
 0x916   : > { %3202 = vrot.lane.b32.xlu0 %v3565_v16, %s3312_s21 }
 0x91a   : > { %1400 = vrot.lane.b32.xlu0 %v1051_v55, %s3313_s22 }
 0x91e   : > { %1404 = vrot.lane.b32.xlu0 %v1223_v47, %s3314_s23 }
 0x98d   : > { %v1311_v20 = vpop.xlane.xlu0 %1310 }
 0x98e   : > { %v1312_v21 = vsub.f32 %v1306_v18, %v1311_v20  ;;  %v2713_v20 = vld [vmem:[%s3857_s6 + $0x7] ss:$0 sm:$0xff] }
 0x990   : > { %v1313_v22 = vmul.f32 1.442695, %v1312_v21 }
 0x991   : > { %v3203_v23 = vpop.permute.xlu0 %3202 }
 0x992   : > { %3218 = vpow2.f32 %v1313_v22  ;;  %v3205_v24 = vunpack.i.h.bf16 %v3203_v23  ;;  %v3204_v62 = vunpack.i.l.bf16 %v3203_v23 }
 0x994   : > { %v3101_v26 = vpack.c.bf16 %v3205_v24, %v3204_v62  ;;  %v1688_v62 = vld [vmem:[%s3856_s5 + $0x110] sm:$0xff] }
 0x995   : > { %v1401_v40 = vpop.permute.xlu0 %1400 }
 0x996   : > { %3102 = vmatpush3.bf16.msra.mxu0 %v3101_v26  ;;  %v1411_v42 = vsel %vm716_vm4, %v3577_v25, %v1401_v40  ;;  %v1689_v26 = vld [vmem:[%s3856_s5 + $0x118] sm:$0xff] }
 0x997   : > { %3103 = vmatprep.subr.bf16.mxu0 %v3306_v3 }
 0x999   : > { %v1405_v41 = vpop.permute.xlu0 %1404 }
 0x99a   : > { %v1412_v44 = vsel %vm796_vm7, %v1411_v42, %v1405_v41 }
 0x99c   : > { %v3219_v27 = vpop.eup %3218 }
 0x99d   : > { %v1315_v16 = vsel %vm796_vm7, %v3219_v27, 0.0 }
 0x99e   : > { %1316 = vadd.xlane.f32.xlu1 %v1315_v16  ;;  %v1687_v16 = vld [vmem:[%s351_s9] sm:$0xff] }
 0xa2b   : > { %v1317_v29 = vpop.xlane.xlu1 %1316 }
 0xa2c   : > { %3220 = vrcp.f32 %v1317_v29 }
 0xa36   : > { %v3221_v30 = vpop.eup %3220 }
 0xa37   : > { %v1319_v31 = vmul.f32 %v3221_v30, %v3219_v27  ;;  %v3119_v27 = vpack.c.bf16 %v1689_v26, %v1688_v62 }
 0xa39   : > { %2944 = vmatmul.mubr.msk.f32.vlgmr.msra.gmra.mrb[8].mxu0 %vm796_vm7, %v1319_v31 }
 0xa3a   : > { %2954 = vmatprep.mubr.msk.f32.mxu0 %vm3307_vm0, %v3308_v6  ;;  %3105 = vmatpush3.bf16.msra.mxu0 %v3104_v35 }
 0xa3b   : > { %3106 = vmatprep.subr.bf16.mxu0 %v3306_v3 }
 0xa3e   : > { %3108 = vmatpush3.bf16.msra.mxu0 %v3107_v37 }
 0xa3f   : > { %3115 = vmatprep.subr.bf16.mxu0 %v3306_v3 }
 0xb0c   : > { %v1395_v38 = vpop.f32.mrb[8].mxu0 }
 0xb0d   : > { %1408 = vrot.lane.b32.xlu0 %v1395_v38, %s3861_s8  ;;  %v2945_v39 = vpop.f32.mrb[9].mxu0 }
 0xb7f   : > { %v1409_v46 = vpop.permute.xlu0 %1408 }
 0xb80   : > { %v1414_v48 = vsel %vm1413_vm8, %v1412_v44, %v1409_v46 }
 0xb81   : > { %2955 = vmatmul.mubr.msk.f32.vlgmr.msra.gmra.mrb[10].mxu0 %vm449_vm2, %v1414_v48 }
 0xb82   : > { %2972 = vmatprep.mubr.msk.f32.mxu0 %vm3307_vm0, %v3308_v6  ;;  %3117 = vmatpush3.bf16.msra.mxu0 %v3116_v63 }
 0xb83   : > { %2982 = vmatprep.subr.mxu0 %v3308_v6 }
 0xc54   : > { %v1493_v50 = vpop.f32.mrb[10].mxu0 }
 0xc55   : > { %v1494_v51 = vadd.f32 %v2709_v49, %v1493_v50  ;;  %v2956_v52 = vpop.f32.mrb[11].mxu0 }
 0xc57   : > { %v1497_v25 = vadd.f32 %v1494_v51, %v3483_v28  ;;  %v1606_v28 = vld [vmem:[%s347_s14] sm:$0xff] }
 0xc58   : > { %2973 = vmatmul.mubr.msk.f32.vlgmr.msra.gmra.mrb[12].mxu0 %vm796_vm7, %v1606_v28 }
 0xc59   : > { %v1500_v53 = vsel %vm449_vm2, %v1497_v25, 0.0  ;;  %2984 = vmatprep.mubr.msk.f32.mxu0 %vm3307_vm0, %v3308_v6 }
 0xc5a   : > { %1501 = vadd.xlane.f32.xlu1 %v1500_v53 }
 0xce7   : > { %v1502_v54 = vpop.xlane.xlu1 %1501 }
 0xce8   : > { %v1504_v45 = vmul.f32 0.03125, %v1502_v54  ;;  %v2717_v54 = vld [vmem:[%s3857_s6 + $0x9] ss:$0 sm:$0xff] }
 0xcea   : > { %v1505_v55 = vsub.f32 %v1497_v25, %v1504_v45 }
 0xcec   : > { %v1506_v56 = vmul.f32 %v1505_v55, %v1505_v55 }
 0xcee   : > { %v1507_v57 = vsel %vm449_vm2, %v1506_v56, 0.0 }
 0xcef   : > { %1508 = vadd.xlane.f32.xlu0 %v1507_v57 }
 0xd2b   : > { %v1683_v18 = vpop.f32.mrb[12].mxu0 }
 0xd2c   : > { %v1684_v19 = vadd.f32 %v2715_v17, %v1683_v18  ;;  %v2974_v43 = vpop.f32.mrb[13].mxu0 }
 0xd2e   : > { %1932 = vrot.lane.b32.xlu1 %v1684_v19, %s3866_s13  ;;  %2263 = vrot.lane.b32.xlu0 %v1684_v19, %s3312_s21 }
 0xd2f   : > { %2983 = vmatpush3.xpose.msk.msra.mxu0 %vm716_vm4, %v1684_v19 }
 0xd30   : > { %2992 = vmatprep.subr.mxu0 %v3308_v6 }
 0xd32   : > { %2098 = vrot.lane.b32.xlu1 %v1684_v19, %s3311_s20 }
 0xd7c   : > { %v1509_v8 = vpop.xlane.xlu0 %1508 }
 0xd7d   : > { %v1510_v9 = vmul.f32 0.03125, %v1509_v8 }
 0xd7f   : > { %v1511_v10 = vadd.f32 1e-05, %v1510_v9 }
 0xd81   : > { %3222 = vrsqrt.f32 %v1511_v10 }
 0xd8b   : > { %v3223_v11 = vpop.eup %3222 }
 0xd8c   : > { %v1513_v13 = vmul.f32 %v3223_v11, %v1505_v55 }
 0xd8e   : > { %v1518_v47 = vmul.f32 %v2711_v12, %v1513_v13 }
 0xd90   : > { %v3690_v15 = vadd.f32 %v2712_v14, %v1518_v47 }
 0xd92   : > { %2966 = vmatmul.mubr.msk.f32.vlgmr.msra.gmra.mrb[14].mxu1 %vm449_vm2, %v3690_v15 }
 0xd93   : > { %2979 = vmatprep.mubr.msk.f32.mxu1 %vm3307_vm0, %v3308_v6  ;;  %3120 = vmatpush3.bf16.msra.mxu1 %v3119_v27 }
 0xd94   : > { %2987 = vmatprep.subr.mxu1 %v3308_v6 }
 0xd96   : > { %2980 = vmatmul.mubr.msk.f32.vlgmr.msra.gmra.mrb[16].mxu1 %vm796_vm7, %v1687_v16 }
 0xd97   : > { %2989 = vmatprep.mubr.msk.f32.mxu1 %vm3307_vm0, %v3308_v6 }
 0xda0   : > { %v1933_v24 = vpop.permute.xlu1 %1932  ;;  %v2264_v32 = vpop.permute.xlu0 %2263 }
 0xda4   : > { %v2099_v29 = vpop.permute.xlu1 %2098 }
 0xe65   : > { %v1602_v21 = vpop.f32.mrb[14].mxu1 }
 0xe66   : > { %v1603_v22 = vadd.f32 %v2713_v20, %v1602_v21  ;;  %v2967_v23 = vpop.f32.mrb[15].mxu1 }
 0xe68   : > { %1930 = vrot.lane.b32.xlu1 %v1603_v22, %s3866_s13  ;;  %2985 = vmatmul.mubr.msk.f32.vlgmr.msra.gmra.mrb[14].mxu0 %vm716_vm4, %v1603_v22 }
 0xe69   : > { %2993 = vmatpush3.xpose.msk.msra.mxu0 %vm716_vm4, %v1933_v24  ;;  %2994 = vmatprep.mubr.msk.f32.mxu0 %vm3307_vm0, %v3308_v6  ;;  %v1764_v45 = vpop.f32.mrb[16].mxu1 }
 0xe6a   : > { %3002 = vmatprep.subr.mxu0 %v3308_v6  ;;  %v1765_v55 = vadd.f32 %v2717_v54, %v1764_v45  ;;  %v2981_v56 = vpop.f32.mrb[17].mxu1 }
 0xe6c   : > { %2096 = vrot.lane.b32.xlu1 %v1603_v22, %s3311_s20  ;;  %2988 = vmatpush3.msra.mxu1 %v1765_v55 }
 0xe6d   : > { %2997 = vmatprep.subr.mxu1 %v3308_v6 }
 0xe70   : > { %2261 = vrot.lane.b32.xlu1 %v1603_v22, %s3312_s21 }
 0xeda   : > { %v1931_v30 = vpop.permute.xlu1 %1930 }
 0xedb   : > { %2995 = vmatmul.mubr.msk.f32.vlgmr.msra.gmra.mrb[16].mxu0 %vm716_vm4, %v1931_v30 }
 0xedc   : > { %3003 = vmatpush3.xpose.msk.msra.mxu0 %vm716_vm4, %v2099_v29  ;;  %3004 = vmatprep.mubr.msk.f32.mxu0 %vm3307_vm0, %v3308_v6 }
 0xedd   : > { %3012 = vmatprep.subr.mxu0 %v3308_v6 }
 0xede   : > { %v2097_v31 = vpop.permute.xlu1 %2096 }
 0xedf   : > { %3005 = vmatmul.mubr.msk.f32.vlgmr.msra.gmra.mrb[18].mxu0 %vm716_vm4, %v2097_v31  ;;  %v2441_v31 = vld [vmem:[%s3856_s5 + $0x120] sm:$0xff] }
 0xee0   : > { %3013 = vmatpush3.xpose.msk.msra.mxu0 %vm716_vm4, %v2264_v32  ;;  %3014 = vmatprep.mubr.msk.f32.mxu0 %vm3307_vm0, %v3308_v6  ;;  %v2442_v32 = vld [vmem:[%s3856_s5 + $0x128] sm:$0xff] }
 0xee1   : > { %3121 = vmatprep.subr.bf16.mxu0 %v3306_v3 }
 0xee2   : > { %v2262_v33 = vpop.permute.xlu1 %2261 }
 0xee3   : > { %3015 = vmatmul.mubr.msk.f32.vlgmr.msra.gmra.mrb[20].mxu0 %vm716_vm4, %v2262_v33  ;;  %v3122_v33 = vpack.c.bf16 %v2442_v32, %v2441_v31 }
 0xee4   : > { %3030 = vmatprep.mubr.msk.f32.mxu0 %vm3307_vm0, %v3308_v6 }
 0xee5   : > { %3123 = vmatpush3.bf16.msra.mxu0 %v3122_v33 }
 0xee6   : > { %3124 = vmatprep.subr.bf16.mxu0 %v3306_v3 }
 0xf3b   : > { %v1842_v35 = vpop.f32.mrb[14].mxu0 }
 0xf3c   : > { %v1843_v36 = vadd.f32 %v1842_v35, %v1769_v34  ;;  %v2986_v37 = vpop.f32.mrb[15].mxu0 }
 0xf3e   : > { %v1846_v38 = vsel %vm716_vm4, %v1843_v36, -inf }
 0xf3f   : > { %1847 = vmax.xlane.f32.xlu1 %v1846_v38 }
 0xfae   : > { %v2004_v39 = vpop.f32.mrb[16].mxu0 }
 0xfaf   : > { %v2005_v40 = vadd.f32 %v2004_v39, %v1769_v34  ;;  %v2996_v41 = vpop.f32.mrb[17].mxu0 }
 0xfb1   : > { %v2008_v42 = vsel %vm716_vm4, %v2005_v40, -inf }
 0xfb2   : > { %2009 = vmax.xlane.f32.xlu0 %v2008_v42  ;;  %v2170_v44 = vpop.f32.mrb[18].mxu0 }
 0xfb3   : > { %v2171_v46 = vadd.f32 %v2170_v44, %v1769_v34  ;;  %v3006_v48 = vpop.f32.mrb[19].mxu0 }
 0xfb5   : > { %v2174_v49 = vsel %vm716_vm4, %v2171_v46, -inf }
 0xfb6   : > { %2175 = vmax.xlane.f32.xlu1 %v2174_v49  ;;  %v2335_v60 = vpop.f32.mrb[20].mxu0 }
 0xfb7   : > { %v2336_v61 = vadd.f32 %v2335_v60, %v1769_v34  ;;  %v3016_v50 = vpop.f32.mrb[21].mxu0  ;;  %v2444_v34 = vld [vmem:[%s3856_s5 + $0x138] sm:$0xff]  ;;  %v2731_v60 = vld [vmem:[%s3857_s6 + $0xa] ss:$0 sm:$0xff] }
 0xfb9   : > { %v2339_v51 = vsel %vm716_vm4, %v2336_v61, -inf }
 0xfba   : > { %2340 = vmax.xlane.f32.xlu1 %v2339_v51 }
 0xfcc   : > { %v1848_v52 = vpop.xlane.xlu1 %1847 }
 0xfcd   : > { %v1849_v25 = vsub.f32 %v1843_v36, %v1848_v52 }
 0xfcf   : > { %v1850_v53 = vmul.f32 1.442695, %v1849_v25 }
 0xfd1   : > { %3224 = vpow2.f32 %v1850_v53 }
 0xfdb   : > { %v3225_v57 = vpop.eup %3224 }
 0xfdc   : > { %v1852_v58 = vsel %vm716_vm4, %v3225_v57, 0.0 }
 0xfdd   : > { %1853 = vadd.xlane.f32.xlu1 %v1852_v58 }
0x103f   : > { %v2010_v59 = vpop.xlane.xlu0 %2009 }
0x1040   : > { %v2011_v63 = vsub.f32 %v2005_v40, %v2010_v59 }
0x1042   : > { %v2012_v28 = vmul.f32 1.442695, %v2011_v63 }
0x1043   : > { %v2176_v0 = vpop.xlane.xlu1 %2175 }
0x1044   : > { %3226 = vpow2.f32 %v2012_v28  ;;  %v2177_v1 = vsub.f32 %v2171_v46, %v2176_v0  ;;  %v2734_v0 = vld [vmem:[%s3857_s6 + $0xc] ss:$0 sm:$0xff] }
0x1046   : > { %v2178_v2 = vmul.f32 1.442695, %v2177_v1 }
0x1047   : > { %v2341_v9 = vpop.xlane.xlu1 %2340 }
0x1048   : > { %3228 = vpow2.f32 %v2178_v2  ;;  %v2342_v11 = vsub.f32 %v2336_v61, %v2341_v9 }
0x104a   : > { %v2343_v12 = vmul.f32 1.442695, %v2342_v11 }
0x104e   : > { %v3227_v4 = vpop.eup %3226 }
0x104f   : > { %v2014_v5 = vsel %vm716_vm4, %v3227_v4, 0.0 }
0x1050   : > { %2015 = vadd.xlane.f32.xlu1 %v2014_v5 }
0x1052   : > { %v3229_v7 = vpop.eup %3228 }
0x1053   : > { %v2180_v8 = vsel %vm716_vm4, %v3229_v7, 0.0 }
0x1054   : > { %2181 = vadd.xlane.f32.xlu0 %v2180_v8 }
0x1061   : > { %2185 = vrot.lane.b32.xlu1 %v1765_v55, %s3311_s20 }
0x106a   : > { %v1854_v10 = vpop.xlane.xlu1 %1853  ;;  %2020 = vrot.lane.b32.xlu0 %v1765_v55, %s3866_s13 }
0x106b   : > { %3230 = vrcp.f32 %v1854_v10 }
0x106c   : > { %3232 = vpow2.f32 %v2343_v12 }
0x1075   : > { %v3231_v13 = vpop.eup %3230 }
0x1076   : > { %v1856_v14 = vmul.f32 %v3231_v13, %v3225_v57  ;;  %v3233_v47 = vpop.eup %3232 }
0x1077   : > { %v2345_v17 = vsel %vm716_vm4, %v3233_v47, 0.0 }
0x1078   : > { %2990 = vmatmul.mubr.msk.f32.vlgmr.msra.gmra.mrb[18].mxu1 %vm716_vm4, %v1856_v14 }
0x1079   : > { %2999 = vmatprep.mubr.msk.f32.mxu1 %vm3307_vm0, %v3308_v6 }
0x1085   : > { %2346 = vadd.xlane.f32.xlu1 %v2345_v17 }
0x1096   : > { %2350 = vrot.lane.b32.xlu1 %v1765_v55, %s3312_s21 }
0x10dd   : > { %v2016_v18 = vpop.xlane.xlu1 %2015 }
0x10de   : > { %3234 = vrcp.f32 %v2016_v18 }
0x10e1   : > { %v2182_v19 = vpop.xlane.xlu0 %2181  ;;  %v2186_v22 = vpop.permute.xlu1 %2185 }
0x10e2   : > { %3236 = vrcp.f32 %v2182_v19 }
0x10e5   : > { %v2021_v43 = vpop.permute.xlu0 %2020 }
0x10e6   : > { %2998 = vmatpush3.msra.mxu1 %v2021_v43 }
0x10e7   : > { %3007 = vmatprep.subr.mxu1 %v3308_v6 }
0x10e8   : > { %v3235_v20 = vpop.eup %3234 }
0x10e9   : > { %v2018_v21 = vmul.f32 %v3235_v20, %v3227_v4 }
0x10eb   : > { %3000 = vmatmul.mubr.msk.f32.vlgmr.msra.gmra.mrb[20].mxu1 %vm716_vm4, %v2018_v21 }
0x10ec   : > { %v3237_v23 = vpop.eup %3236  ;;  %3008 = vmatpush3.msra.mxu1 %v2186_v22  ;;  %3009 = vmatprep.mubr.msk.f32.mxu1 %vm3307_vm0, %v3308_v6 }
0x10ed   : > { %v2184_v24 = vmul.f32 %v3237_v23, %v3229_v7  ;;  %3017 = vmatprep.subr.mxu1 %v3308_v6 }
0x10ef   : > { %3010 = vmatmul.mubr.msk.f32.vlgmr.msra.gmra.mrb[22].mxu1 %vm716_vm4, %v2184_v24 }
0x10f0   : > { %3019 = vmatprep.mubr.msk.f32.mxu1 %vm3307_vm0, %v3308_v6  ;;  %v2443_v6 = vld [vmem:[%s3856_s5 + $0x130] sm:$0xff] }
0x10f1   : > { %v3125_v35 = vpack.c.bf16 %v2444_v34, %v2443_v6 }
0x10f3   : > { %3126 = vmatpush3.bf16.msra.mxu0 %v3125_v35 }
0x1112   : > { %v2347_v62 = vpop.xlane.xlu1 %2346 }
0x1113   : > { %3238 = vrcp.f32 %v2347_v62 }
0x1116   : > { %v2351_v26 = vpop.permute.xlu1 %2350 }
0x1117   : > { %3018 = vmatpush3.msra.mxu1 %v2351_v26 }
0x111d   : > { %v3239_v27 = vpop.eup %3238 }
0x111e   : > { %v2349_v16 = vmul.f32 %v3239_v27, %v3233_v47 }
0x1120   : > { %3020 = vmatmul.mubr.msk.f32.vlgmr.msra.gmra.mrb[24].mxu1 %vm716_vm4, %v2349_v16 }
0x114b   : > { %v1926_v29 = vpop.f32.mrb[18].mxu1 }
0x114c   : > { %v2991_v30 = vpop.f32.mrb[19].mxu1 }
0x11be   : > { %v2092_v36 = vpop.f32.mrb[20].mxu1 }
0x11bf   : > { %2427 = vrot.lane.b32.xlu0 %v2092_v36, %s3313_s22  ;;  %v3001_v37 = vpop.f32.mrb[21].mxu1 }
0x11c2   : > { %v2257_v38 = vpop.f32.mrb[22].mxu1 }
0x11c3   : > { %2431 = vrot.lane.b32.xlu1 %v2257_v38, %s3314_s23  ;;  %v3011_v39 = vpop.f32.mrb[23].mxu1  ;;  %s325_s23 = sand.u32 1, %s3296_s25  }
0x11c4   : > { %s2675_s29 = sshll.u32 %s325_s23, 3  ;;  %s2551_s22 = scalar_lea.sflag [#allocation3], %s325_s23 }
0x11c5   : > { %s327_s16 = scalar_lea.vmem [#allocation2], %s2675_s29  ;;  %s3246_s29 = sshll.u32 %s3316_s28, 4  ;;  %s3247_s29 = int_to_ptr.vmem [resolvable:$false] %s3246_s29 }
0x11c6   : > { %s2564_s17 = sshll.u32 %s327_s16, 4  ;;  %s3248_s14 = scalar_lea.vmem %s3247_s29, 256  ;;  %s3810_s17 = int_to_ptr.vmem [resolvable:$true] %s2564_s17 }
0x11c7   : > { %s3242_s9 = scalar_lea.vmem %s3810_s17, 128  ;;  %p3249_p1 = scmp.lt.s32.totalorder %s3810_s17, %s3247_s29 }
0x11c8   : > { %p3243_p12 = scmp.ne.s32.totalorder %s3810_s17, %s3242_s9  ;;  %p3250_p2 = scmp.lt.s32.totalorder %s3248_s14, %s3242_s9 }
0x11ca   : > { %p3244_p13 = pnand %p3243_p12, %p3395_p5  ;;  %p3251_p3 = por %p3250_p2, %p3249_p1 }
0x11cc   : > { %p3245_p0 = pneg %p3244_p13 }
0x11ce   : > { %p3252_p4 = pnand %p3251_p3, %p3245_p0 }
0x11f3   : > { %v2422_v40 = vpop.f32.mrb[24].mxu1 }
0x11f4   : > { %2435 = vrot.lane.b32.xlu0 %v2422_v40, %s3867_s19  ;;  %v3021_v41 = vpop.f32.mrb[25].mxu1  ;;  %s3808_s19 = scalar_lea.hbm %s3858_s7, %s2736_s15 }
0x1231   : > { %v2428_v42 = vpop.permute.xlu0 %2427 }
0x1232   : > { %v2438_v46 = vsel %vm716_vm4, %v1926_v29, %v2428_v42 }
0x1235   : > { %v2432_v44 = vpop.permute.xlu1 %2431 }
0x1236   : > { %v2439_v48 = vsel %vm796_vm7, %v2438_v46, %v2432_v44 }
0x1266   : > { %v2436_v3 = vpop.permute.xlu0 %2435 }
0x1267   : > { %v2440_v49 = vsel %vm1413_vm8, %v2439_v48, %v2436_v3 }
0x1268   : > { %3031 = vmatmul.mubr.msk.f32.vlgmr.msra.gmra.mrb[22].mxu0 %vm449_vm2, %v2440_v49 }
0x133b   : > { %v2519_v61 = vpop.f32.mrb[22].mxu0 }
0x133c   : > { %v2520_v50 = vadd.f32 %v2731_v60, %v2519_v61  ;;  %v3032_v51 = vpop.f32.mrb[23].mxu0 }
0x133e   : > { %v2523_v52 = vadd.f32 %v2520_v50, %v3690_v15  ;;  %v2733_v15 = vld [vmem:[%s3857_s6 + $0xb] ss:$0 sm:$0xff] }
0x1340   : > { %v2526_v25 = vsel %vm449_vm2, %v2523_v52, 0.0 }
0x1341   : > { %2527 = vadd.xlane.f32.xlu1 %v2526_v25 }
0x13ce   : > { %v2528_v53 = vpop.xlane.xlu1 %2527 }
0x13cf   : > { %v2529_v54 = vmul.f32 0.03125, %v2528_v53 }
0x13d1   : > { %v2530_v45 = vsub.f32 %v2523_v52, %v2529_v54 }
0x13d3   : > { %v2531_v55 = vmul.f32 %v2530_v45, %v2530_v45 }
0x13d5   : > { %v2532_v56 = vsel %vm449_vm2, %v2531_v55, 0.0 }
0x13d6   : > { %2533 = vadd.xlane.f32.xlu0 %v2532_v56 }
0x1463   : > { %v2534_v57 = vpop.xlane.xlu0 %2533 }
0x1464   : > { %v2535_v58 = vmul.f32 0.03125, %v2534_v57 }
0x1466   : > { %v2536_v59 = vadd.f32 1e-05, %v2535_v58 }
0x1468   : > { %3240 = vrsqrt.f32 %v2536_v59 }
0x1472   : > { %v3241_v63 = vpop.eup %3240 }
0x1473   : > { %v2538_v28 = vmul.f32 %v3241_v63, %v2530_v45 }
0x1475   : > { %v2543_v1 = vmul.f32 %v2733_v15, %v2538_v28 }
0x1477   : > { %v2548_v2 = vadd.f32 %v2734_v0, %v2543_v1 }
0x1479   : > { %2549 = vst.msk [vmem:[%s327_s16] sm:$0xff] %vm449_vm2, %v2548_v2 }
0x147a   : > { %3255 = shalt.err (!%p3252_p4)
}
0x147b   : > { %s3256_s23 = scalar_lea.hbm %s3808_s19, 128  ;;  %s3260_s21 = scalar_lea.hbm %s3858_s7, 256 }
0x147c   : > { %p3257_p7 = scmp.ne.s32.totalorder %s3808_s19, %s3256_s23  ;;  %p3261_p10 = scmp.lt.u32.totalorder %s3808_s19, %s3858_s7 }
0x147d   : > { %p3262_p11 = scmp.lt.u32.totalorder %s3260_s21, %s3256_s23  ;;  %p3264_p13 = scmp.lt.u32.totalorder %s3256_s23, %s3808_s19 }
0x147e   : > { %p3258_p8 = pnand %p3257_p7, %p3395_p5 }
0x147f   : > { %p3263_p12 = por %p3262_p11, %p3261_p10 }
0x1480   : > { %p3259_p9 = pneg %p3258_p8 }
0x1481   : > { %p3265_p0 = por %p3264_p13, %p3263_p12 }
0x1483   : > { %p3266_p1 = pnand %p3265_p0, %p3259_p9 }
0x1485   : > { %3269 = shalt.err (!%p3266_p1)
}
0x1486   : > { %3127 = dma.vmem_to_hbm [thread:$0]  (%p3395_p5), %s3810_s17, 128, %s3808_s19, %s2551_s22  }
0x1487 PF: > { %p3133_p2 = scmp.ge.s32.totalorder %s3304_s27, 2  ;;  %s2576_s18 = sand.u32 1, %s3292_s24  }
0x1488   : > { %s2577_s8 = scalar_lea.sflag [#allocation3], %s2576_s18 }
0x1489   : > { %p3130_p3 = pnand %p3133_p2, %p3399_p6 }
0x148b   : > { %3287 = dma.done.wait (!%p3130_p3), %s2577_s8, 128  }
0x148c   : > { %3289 = vsyncadd (!%p3130_p3), %s2577_s8, 4294967168  ;;  %p17_p4 = scmp.ge.s32.totalorder %s3382_s30, 4   ;;  %s3868_s24 = smov %s3296_s25 }
0x148d   : > { %s3869_s25 = smov %s3300_s26  ;;  %s3870_s26 = smov %s3393_s10 }
0x148e   : > { %s3871_s27 = smov %s3382_s30  ;;  %19 = sbr.rel (!%p17_p4) target bundleno = 3 (0x3), region = 95 }
0x1495   :  { %2582 = vsyncpa [#allocation3], 1 }
0x1496   :  { %2584 = vsyncpa [#allocation3 + $0x1], 1 }

</bundles_post_ra>
